<compile_context>
chip_gen: v7x
topology: tpu7x:2x2x1
jax: 0.10.0
libtpu: 0.0.40
codegen_flags: <defaults>
</compile_context>

<pallas_src>
import math
from functools import partial

import jax
import jax.numpy as jnp
import numpy as np
from jax.experimental import pallas as pl
from jax.experimental.pallas import tpu as pltpu

EPS = 1e-5
HIGHEST = jax.lax.Precision.HIGHEST


def _shift_lanes(a, s):
    """out[:, l] = a[:, l + s], zero outside [0, L).  `s` is a static int."""
    if s == 0:
        return a
    c, L = a.shape
    zeros = jnp.zeros((c, abs(s)), a.dtype)
    if s > 0:
        return jnp.concatenate([a[:, s:], zeros], axis=1)
    return jnp.concatenate([zeros, a[:, :L + s]], axis=1)


def _conv_taps(a_f32, w_ref, K, pad):
    """K-tap 1D conv (stride 1, 'same' padding) in (C, L) layout.

    a_f32: (C_in, L) float32; w_ref: (K, C_out, C_in) bf16 Ref.
    Each tap is a bf16 MXU matmul accumulated in f32.
    """
    c_out = w_ref.shape[1]
    L = a_f32.shape[1]
    acc = jnp.zeros((c_out, L), jnp.float32)
    for k in range(K):
        xs = _shift_lanes(a_f32, k - pad).astype(jnp.bfloat16)
        acc = acc + jnp.dot(w_ref[k], xs, preferred_element_type=jnp.float32)
    return acc


def _group_norm_cl(h, m, mt, gamma, beta, n_per_group):
    """GroupNorm for one sample in (C, L) layout (stats kept in f32).

    h: (C, L) f32, m: (C, G), mt: (G, C), gamma/beta: (C, 1).
    """
    L = h.shape[1]
    # One matmul produces both sum(x) and sum(x^2) per group.
    cat = jnp.concatenate([h, h * h], axis=1)                      # (C, 2L)
    grp = jnp.dot(mt, cat, precision=HIGHEST,
                  preferred_element_type=jnp.float32)              # (G, 2L)
    s1 = jnp.sum(grp[:, :L], axis=1, keepdims=True)                # (G, 1)
    s2 = jnp.sum(grp[:, L:], axis=1, keepdims=True)                # (G, 1)
    inv_n = 1.0 / n_per_group
    mean_g = s1 * inv_n
    var_g = s2 * inv_n - mean_g * mean_g
    # Broadcast per-group stats back to channels with one tiny matmul.
    mv = jnp.concatenate([mean_g, var_g], axis=1)                  # (G, 2)
    mv_c = jnp.dot(m, mv, precision=HIGHEST,
                   preferred_element_type=jnp.float32)             # (C, 2)
    mean_c = mv_c[:, 0:1]
    var_c = mv_c[:, 1:2]
    inv = jax.lax.rsqrt(var_c + EPS)
    return (h - mean_c) * inv * gamma + beta


def res1d_kernel(x_ref, w1_ref, w2_ref, wd_ref, gnp_ref, m_ref, mt_ref,
                 out_ref, *, K, pad, n_per_group, TB):
    m = m_ref[...]
    mt = mt_ref[...]
    gnp = gnp_ref[...]                     # (C_out, 6): [g1 b1 g2 b2 gd bd]
    g1, b1 = gnp[:, 0:1], gnp[:, 1:2]
    g2, b2 = gnp[:, 2:3], gnp[:, 3:4]
    gd, bd = gnp[:, 4:5], gnp[:, 5:6]
    wd = wd_ref[...]                       # (C_out, C_in) bf16

    for t in range(TB):
        x_t = x_ref[t]                     # (C_in, L) f32

        # ---- downsample branch first (keeps fewer big f32 temps alive) ----
        xd = jnp.dot(wd, x_t.astype(jnp.bfloat16),
                     preferred_element_type=jnp.float32)
        xd = _group_norm_cl(xd, m, mt, gd, bd, n_per_group)

        # ---- conv1 -> GN -> ReLU ----
        h = _conv_taps(x_t, w1_ref, K, pad)
        h = _group_norm_cl(h, m, mt, g1, b1, n_per_group)
        h = jnp.maximum(h, 0.0)

        # ---- conv2 -> GN ----
        h2 = _conv_taps(h, w2_ref, K, pad)
        h2 = _group_norm_cl(h2, m, mt, g2, b2, n_per_group)

        # ---- residual add + final ReLU (act=True) ----
        out_ref[t] = jnp.maximum(h2 + xd, 0.0).astype(out_ref.dtype)


def res1d_forward(x_ncl, params, kernel_size=3, ng=32, block_b=None):
    """x_ncl: (N, C_in, L) as in PyTorch.  Returns (N, C_out, L).

    params layout (derived from the PyTorch module):
      w1: (K, C_out, C_in)   = conv1.weight.permute(2, 0, 1)
      w2: (K, C_out, C_out)  = conv2.weight.permute(2, 0, 1)
      wd: (C_out, C_in)      = downsample[0].weight[:, :, 0]
      g*/b*: (C_out,)        GroupNorm gamma/beta for bn1, bn2, downsample[1]
    """
    assert kernel_size % 2 == 1, "only odd kernel_size (stride=1) implemented"
    B, c_in, L = x_ncl.shape
    K = kernel_size
    pad = (K - 1) // 2
    c_out = params["w1"].shape[1]
    G = math.gcd(ng, c_out)
    cg = c_out // G
    n_per_group = float(L * cg)

    # Batch tile: amortizes the ~0.35us per-grid-step overhead. Must divide B.
    if block_b is None:
        block_b = next(tb for tb in (8, 4, 2, 1) if B % tb == 0)
    TB = block_b
    assert B % TB == 0

    # Cast conv weights to bf16 once (MXU operands); GN params stay f32.
    w1b = params["w1"].astype(jnp.bfloat16)
    w2b = params["w2"].astype(jnp.bfloat16)
    wdb = params["wd"].astype(jnp.bfloat16)
    gnp = jnp.stack([params["g1"], params["b1"], params["g2"], params["b2"],
                     params["gd"], params["bd"]], axis=1).astype(jnp.float32)

    # One-hot group membership (channel c belongs to group c // cg).
    ch = np.arange(c_out)
    m_np = (ch[:, None] // cg == np.arange(G)[None, :]).astype(np.float32)
    m = jnp.asarray(m_np)          # (C_out, G)
    mt = jnp.asarray(m_np.T)       # (G, C_out)

    def full(shape):
        n = len(shape)
        return pl.BlockSpec(shape, lambda b, n=n: (0,) * n)

    kernel = partial(res1d_kernel, K=K, pad=pad,
                     n_per_group=n_per_group, TB=TB)

    # NOTE: at production sizes, re-derive TB so that the double-buffered
    # (TB, C, L) input/output blocks plus ~3 live (C_out, L) f32 temps fit the
    # scoped VMEM budget (tighter on v7x: 64 MiB physical).
    out = pl.pallas_call(
        kernel,
        out_shape=jax.ShapeDtypeStruct((B, c_out, L), x_ncl.dtype),
        grid=(B // TB,),
        in_specs=[
            pl.BlockSpec((TB, c_in, L), lambda b: (b, 0, 0)),   # x (NCL)
            full((K, c_out, c_in)),                             # w1 (bf16)
            full((K, c_out, c_out)),                            # w2 (bf16)
            full((c_out, c_in)),                                # wd (bf16)
            full((c_out, 6)),                                   # gamma/beta pack
            full((c_out, G)),                                   # membership m
            full((G, c_out)),                                   # m^T
        ],
        out_specs=pl.BlockSpec((TB, c_out, L), lambda b: (b, 0, 0)),
        compiler_params=pltpu.CompilerParams(
            dimension_semantics=("parallel",)),                 # megacore on v7x
    )(x_ncl, w1b, w2b, wdb, gnp, m, mt)
    return out


def res1d_reference(x, params, kernel_size=3, ng=32, mxu_dtype=jnp.float32):
    """Pure-JAX reference (GN, stride=1, act=True), NCL layout.

    mxu_dtype=bfloat16 reproduces the kernel's MXU precision policy
    (bf16 operands, f32 accumulation); mxu_dtype=float32 is full-f32 math.
    """
    B, c_in, L = x.shape
    K = kernel_size
    pad = (K - 1) // 2
    c_out = params["w1"].shape[1]
    G = math.gcd(ng, c_out)

    def conv(inp, w):
        xp = jnp.pad(inp, ((0, 0), (0, 0), (pad, pad))).astype(mxu_dtype)
        wc = w.astype(mxu_dtype)
        out = jnp.zeros((B, w.shape[1], L), jnp.float32)
        for k in range(K):
            out = out + jnp.einsum("oc,bcl->bol", wc[k], xp[:, :, k:k + L],
                                   precision=HIGHEST,
                                   preferred_element_type=jnp.float32)
        return out

    def gn(h, gamma, beta):
        C = h.shape[1]
        cg = C // G
        hg = h.reshape(B, G, cg, L)
        mean = hg.mean(axis=(2, 3), keepdims=True)
        var = ((hg - mean) ** 2).mean(axis=(2, 3), keepdims=True)
        y = ((hg - mean) / jnp.sqrt(var + EPS)).reshape(B, C, L)
        return y * gamma[None, :, None] + beta[None, :, None]

    h = jax.nn.relu(gn(conv(x, params["w1"]), params["g1"], params["b1"]))
    h = gn(conv(h, params["w2"]), params["g2"], params["b2"])
    xd = jnp.einsum("oc,bcl->bol", params["wd"].astype(mxu_dtype),
                    x.astype(mxu_dtype), precision=HIGHEST,
                    preferred_element_type=jnp.float32)
    xd = gn(xd, params["gd"], params["bd"])
    return jax.nn.relu(h + xd)


if __name__ == "__main__":
    B, C_IN, C_OUT, L, K = 2, 4, 8, 16, 3

    keys = jax.random.split(jax.random.PRNGKey(0), 10)
    x = jax.random.normal(keys[0], (B, C_IN, L), jnp.float32)

    params = {
        "w1": 0.3 * jax.random.normal(keys[1], (K, C_OUT, C_IN), jnp.float32),
        "w2": 0.3 * jax.random.normal(keys[2], (K, C_OUT, C_OUT), jnp.float32),
        "wd": 0.3 * jax.random.normal(keys[3], (C_OUT, C_IN), jnp.float32),
        "g1": 1.0 + 0.1 * jax.random.normal(keys[4], (C_OUT,), jnp.float32),
        "b1": 0.1 * jax.random.normal(keys[5], (C_OUT,), jnp.float32),
        "g2": 1.0 + 0.1 * jax.random.normal(keys[6], (C_OUT,), jnp.float32),
        "b2": 0.1 * jax.random.normal(keys[7], (C_OUT,), jnp.float32),
        "gd": 1.0 + 0.1 * jax.random.normal(keys[8], (C_OUT,), jnp.float32),
        "bd": 0.1 * jax.random.normal(keys[9], (C_OUT,), jnp.float32),
    }

    out = jax.block_until_ready(res1d_forward(x, params))
    assert out.shape == (B, C_OUT, L), out.shape

    # Structural check: reference using the same bf16-MXU / f32-accumulation
    # precision policy as the kernel -> tight tolerance.
    ref_bf16 = jax.block_until_ready(
        res1d_reference(x, params, mxu_dtype=jnp.bfloat16))
    np.testing.assert_allclose(np.asarray(out), np.asarray(ref_bf16),
                               rtol=1e-2, atol=1e-2)

    # Semantic check against full-f32 math (PyTorch semantics); looser because
    # the kernel feeds bf16 operands to the MXU (standard TPU trade-off).
    ref_f32 = jax.block_until_ready(
        res1d_reference(x, params, mxu_dtype=jnp.float32))
    np.testing.assert_allclose(np.asarray(out), np.asarray(ref_f32),
                               rtol=5e-2, atol=5e-2)

    print("KERNEL_OK")
</pallas_src>

<mosaic_0001>
module attributes {stable_mosaic.version = 11 : i64} {
  func.func @res1d_kernel(%arg0: i32, %arg1: memref<2x4x16xf32, #tpu.memory_space<vmem>>, %arg2: memref<3x8x4xbf16, #tpu.memory_space<vmem>>, %arg3: memref<3x8x8xbf16, #tpu.memory_space<vmem>>, %arg4: memref<8x4xbf16, #tpu.memory_space<vmem>>, %arg5: memref<8x6xf32, #tpu.memory_space<vmem>>, %arg6: memref<8x8xf32, #tpu.memory_space<vmem>>, %arg7: memref<8x8xf32, #tpu.memory_space<vmem>>, %arg8: memref<2x8x16xf32, #tpu.memory_space<vmem>>) attributes {dimension_semantics = [#tpu.dimension_semantics<parallel>], iteration_bounds = array<i64: 1>, scalar_prefetch = 0 : i64, scratch_operands = 0 : i64, tpu.core_type = #tpu.core_type<tc>, window_params = [{transform_indices = @transform_0, window_bounds = array<i64: 2, 4, 16>}, {pipeline_mode = #tpu.pipeline_mode<synchronous>, transform_indices = @transform_1, window_bounds = array<i64: 3, 8, 4>}, {pipeline_mode = #tpu.pipeline_mode<synchronous>, transform_indices = @transform_2, window_bounds = array<i64: 3, 8, 8>}, {pipeline_mode = #tpu.pipeline_mode<synchronous>, transform_indices = @transform_3, window_bounds = array<i64: 8, 4>}, {pipeline_mode = #tpu.pipeline_mode<synchronous>, transform_indices = @transform_4, window_bounds = array<i64: 8, 6>}, {pipeline_mode = #tpu.pipeline_mode<synchronous>, transform_indices = @transform_5, window_bounds = array<i64: 8, 8>}, {pipeline_mode = #tpu.pipeline_mode<synchronous>, transform_indices = @transform_6, window_bounds = array<i64: 8, 8>}, {transform_indices = @transform_7, window_bounds = array<i64: 2, 8, 16>}]} {
    %c0 = arith.constant 0 : index
    %c0_0 = arith.constant 0 : index
    %0 = vector.load %arg6[%c0, %c0_0] : memref<8x8xf32, #tpu.memory_space<vmem>>, vector<8x8xf32>
    %c0_1 = arith.constant 0 : index
    %c0_2 = arith.constant 0 : index
    %1 = vector.load %arg7[%c0_1, %c0_2] : memref<8x8xf32, #tpu.memory_space<vmem>>, vector<8x8xf32>
    %c0_3 = arith.constant 0 : index
    %c0_4 = arith.constant 0 : index
    %2 = vector.load %arg5[%c0_3, %c0_4] : memref<8x6xf32, #tpu.memory_space<vmem>>, vector<8x6xf32>
    %3 = vector.extract_strided_slice %2 {offsets = [0, 0], sizes = [8, 1], strides = [1, 1]} : vector<8x6xf32> to vector<8x1xf32>
    %4 = vector.extract_strided_slice %2 {offsets = [0, 1], sizes = [8, 1], strides = [1, 1]} : vector<8x6xf32> to vector<8x1xf32>
    %5 = vector.extract_strided_slice %2 {offsets = [0, 2], sizes = [8, 1], strides = [1, 1]} : vector<8x6xf32> to vector<8x1xf32>
    %6 = vector.extract_strided_slice %2 {offsets = [0, 3], sizes = [8, 1], strides = [1, 1]} : vector<8x6xf32> to vector<8x1xf32>
    %7 = vector.extract_strided_slice %2 {offsets = [0, 4], sizes = [8, 1], strides = [1, 1]} : vector<8x6xf32> to vector<8x1xf32>
    %8 = vector.extract_strided_slice %2 {offsets = [0, 5], sizes = [8, 1], strides = [1, 1]} : vector<8x6xf32> to vector<8x1xf32>
    %c0_5 = arith.constant 0 : index
    %c0_6 = arith.constant 0 : index
    %9 = vector.load %arg4[%c0_5, %c0_6] : memref<8x4xbf16, #tpu.memory_space<vmem>>, vector<8x4xbf16>
    %c0_7 = arith.constant 0 : index
    %c0_8 = arith.constant 0 : index
    %c0_9 = arith.constant 0 : index
    %10 = vector.load %arg1[%c0_7, %c0_8, %c0_9] : memref<2x4x16xf32, #tpu.memory_space<vmem>>, vector<1x4x16xf32>
    %11 = vector.shape_cast %10 : vector<1x4x16xf32> to vector<4x16xf32>
    %12 = arith.truncf %11 : vector<4x16xf32> to vector<4x16xbf16>
    %cst = arith.constant dense<0.000000e+00> : vector<8x16xf32>
    %13 = tpu.matmul %9, %12, %cst {dimension_numbers = #tpu.dot_dimension_numbers<[1], [0], [0], [1], [0, 0, 1, 1], [], []>} : vector<8x4xbf16>, vector<4x16xbf16>, vector<8x16xf32> -> vector<8x16xf32>
    %14 = arith.mulf %13, %13 : vector<8x16xf32>
    %15 = tpu.concatenate %13, %14 in 1 : vector<8x16xf32>, vector<8x16xf32> -> vector<8x32xf32>
    %cst_10 = arith.constant dense<0.000000e+00> : vector<8x32xf32>
    %16 = tpu.matmul %1, %15, %cst_10 {dimension_numbers = #tpu.dot_dimension_numbers<[1], [0], [0], [1], [0, 0, 1, 1], [], []>, precision = #tpu.contract_precision<fp32>} : vector<8x8xf32>, vector<8x32xf32>, vector<8x32xf32> -> vector<8x32xf32>
    %17 = vector.extract_strided_slice %16 {offsets = [0, 0], sizes = [8, 16], strides = [1, 1]} : vector<8x32xf32> to vector<8x16xf32>
    %cst_11 = arith.constant dense<0.000000e+00> : vector<8xf32>
    %18 = vector.multi_reduction <add>, %17, %cst_11 [1] : vector<8x16xf32> to vector<8xf32>
    %19 = vector.shape_cast %18 : vector<8xf32> to vector<8x1xf32>
    %20 = vector.extract_strided_slice %16 {offsets = [0, 16], sizes = [8, 16], strides = [1, 1]} : vector<8x32xf32> to vector<8x16xf32>
    %cst_12 = arith.constant dense<0.000000e+00> : vector<8xf32>
    %21 = vector.multi_reduction <add>, %20, %cst_12 [1] : vector<8x16xf32> to vector<8xf32>
    %22 = vector.shape_cast %21 : vector<8xf32> to vector<8x1xf32>
    %cst_13 = arith.constant 6.250000e-02 : f32
    %23 = vector.broadcast %cst_13 : f32 to vector<8x1xf32>
    %24 = arith.mulf %19, %23 : vector<8x1xf32>
    %cst_14 = arith.constant 6.250000e-02 : f32
    %25 = vector.broadcast %cst_14 : f32 to vector<8x1xf32>
    %26 = arith.mulf %22, %25 : vector<8x1xf32>
    %27 = arith.mulf %24, %24 : vector<8x1xf32>
    %28 = arith.subf %26, %27 : vector<8x1xf32>
    %29 = tpu.concatenate %24, %28 in 1 : vector<8x1xf32>, vector<8x1xf32> -> vector<8x2xf32>
    %cst_15 = arith.constant dense<0.000000e+00> : vector<8x2xf32>
    %30 = tpu.matmul %0, %29, %cst_15 {dimension_numbers = #tpu.dot_dimension_numbers<[1], [0], [0], [1], [0, 0, 1, 1], [], []>, precision = #tpu.contract_precision<fp32>} : vector<8x8xf32>, vector<8x2xf32>, vector<8x2xf32> -> vector<8x2xf32>
    %31 = vector.extract_strided_slice %30 {offsets = [0, 0], sizes = [8, 1], strides = [1, 1]} : vector<8x2xf32> to vector<8x1xf32>
    %32 = vector.extract_strided_slice %30 {offsets = [0, 1], sizes = [8, 1], strides = [1, 1]} : vector<8x2xf32> to vector<8x1xf32>
    %cst_16 = arith.constant 9.99999974E-6 : f32
    %33 = vector.broadcast %cst_16 : f32 to vector<8x1xf32>
    %34 = arith.addf %32, %33 : vector<8x1xf32>
    %35 = math.rsqrt %34 : vector<8x1xf32>
    %36 = vector.broadcast %31 : vector<8x1xf32> to vector<8x16xf32>
    %37 = arith.subf %13, %36 : vector<8x16xf32>
    %38 = vector.broadcast %35 : vector<8x1xf32> to vector<8x16xf32>
    %39 = arith.mulf %37, %38 : vector<8x16xf32>
    %40 = vector.broadcast %7 : vector<8x1xf32> to vector<8x16xf32>
    %41 = arith.mulf %39, %40 : vector<8x16xf32>
    %42 = vector.broadcast %8 : vector<8x1xf32> to vector<8x16xf32>
    %43 = arith.addf %41, %42 : vector<8x16xf32>
    %cst_17 = arith.constant 0.000000e+00 : f32
    %44 = vector.broadcast %cst_17 : f32 to vector<8x16xf32>
    %cst_18 = arith.constant 0.000000e+00 : f32
    %45 = vector.broadcast %cst_18 : f32 to vector<4x1xf32>
    %46 = vector.extract_strided_slice %11 {offsets = [0, 0], sizes = [4, 15], strides = [1, 1]} : vector<4x16xf32> to vector<4x15xf32>
    %47 = tpu.concatenate %45, %46 in 1 : vector<4x1xf32>, vector<4x15xf32> -> vector<4x16xf32>
    %48 = arith.truncf %47 : vector<4x16xf32> to vector<4x16xbf16>
    %c0_19 = arith.constant 0 : index
    %c0_20 = arith.constant 0 : index
    %c0_21 = arith.constant 0 : index
    %49 = vector.load %arg2[%c0_19, %c0_20, %c0_21] : memref<3x8x4xbf16, #tpu.memory_space<vmem>>, vector<1x8x4xbf16>
    %50 = vector.shape_cast %49 : vector<1x8x4xbf16> to vector<8x4xbf16>
    %cst_22 = arith.constant dense<0.000000e+00> : vector<8x16xf32>
    %51 = tpu.matmul %50, %48, %cst_22 {dimension_numbers = #tpu.dot_dimension_numbers<[1], [0], [0], [1], [0, 0, 1, 1], [], []>} : vector<8x4xbf16>, vector<4x16xbf16>, vector<8x16xf32> -> vector<8x16xf32>
    %52 = arith.addf %44, %51 : vector<8x16xf32>
    %53 = arith.truncf %11 : vector<4x16xf32> to vector<4x16xbf16>
    %c1 = arith.constant 1 : index
    %c0_23 = arith.constant 0 : index
    %c0_24 = arith.constant 0 : index
    %54 = vector.load %arg2[%c1, %c0_23, %c0_24] : memref<3x8x4xbf16, #tpu.memory_space<vmem>>, vector<1x8x4xbf16>
    %55 = vector.shape_cast %54 : vector<1x8x4xbf16> to vector<8x4xbf16>
    %cst_25 = arith.constant dense<0.000000e+00> : vector<8x16xf32>
    %56 = tpu.matmul %55, %53, %cst_25 {dimension_numbers = #tpu.dot_dimension_numbers<[1], [0], [0], [1], [0, 0, 1, 1], [], []>} : vector<8x4xbf16>, vector<4x16xbf16>, vector<8x16xf32> -> vector<8x16xf32>
    %57 = arith.addf %52, %56 : vector<8x16xf32>
    %cst_26 = arith.constant 0.000000e+00 : f32
    %58 = vector.broadcast %cst_26 : f32 to vector<4x1xf32>
    %59 = vector.extract_strided_slice %11 {offsets = [0, 1], sizes = [4, 15], strides = [1, 1]} : vector<4x16xf32> to vector<4x15xf32>
    %60 = tpu.concatenate %59, %58 in 1 : vector<4x15xf32>, vector<4x1xf32> -> vector<4x16xf32>
    %61 = arith.truncf %60 : vector<4x16xf32> to vector<4x16xbf16>
    %c2 = arith.constant 2 : index
    %c0_27 = arith.constant 0 : index
    %c0_28 = arith.constant 0 : index
    %62 = vector.load %arg2[%c2, %c0_27, %c0_28] : memref<3x8x4xbf16, #tpu.memory_space<vmem>>, vector<1x8x4xbf16>
    %63 = vector.shape_cast %62 : vector<1x8x4xbf16> to vector<8x4xbf16>
    %cst_29 = arith.constant dense<0.000000e+00> : vector<8x16xf32>
    %64 = tpu.matmul %63, %61, %cst_29 {dimension_numbers = #tpu.dot_dimension_numbers<[1], [0], [0], [1], [0, 0, 1, 1], [], []>} : vector<8x4xbf16>, vector<4x16xbf16>, vector<8x16xf32> -> vector<8x16xf32>
    %65 = arith.addf %57, %64 : vector<8x16xf32>
    %66 = arith.mulf %65, %65 : vector<8x16xf32>
    %67 = tpu.concatenate %65, %66 in 1 : vector<8x16xf32>, vector<8x16xf32> -> vector<8x32xf32>
    %cst_30 = arith.constant dense<0.000000e+00> : vector<8x32xf32>
    %68 = tpu.matmul %1, %67, %cst_30 {dimension_numbers = #tpu.dot_dimension_numbers<[1], [0], [0], [1], [0, 0, 1, 1], [], []>, precision = #tpu.contract_precision<fp32>} : vector<8x8xf32>, vector<8x32xf32>, vector<8x32xf32> -> vector<8x32xf32>
    %69 = vector.extract_strided_slice %68 {offsets = [0, 0], sizes = [8, 16], strides = [1, 1]} : vector<8x32xf32> to vector<8x16xf32>
    %cst_31 = arith.constant dense<0.000000e+00> : vector<8xf32>
    %70 = vector.multi_reduction <add>, %69, %cst_31 [1] : vector<8x16xf32> to vector<8xf32>
    %71 = vector.shape_cast %70 : vector<8xf32> to vector<8x1xf32>
    %72 = vector.extract_strided_slice %68 {offsets = [0, 16], sizes = [8, 16], strides = [1, 1]} : vector<8x32xf32> to vector<8x16xf32>
    %cst_32 = arith.constant dense<0.000000e+00> : vector<8xf32>
    %73 = vector.multi_reduction <add>, %72, %cst_32 [1] : vector<8x16xf32> to vector<8xf32>
    %74 = vector.shape_cast %73 : vector<8xf32> to vector<8x1xf32>
    %cst_33 = arith.constant 6.250000e-02 : f32
    %75 = vector.broadcast %cst_33 : f32 to vector<8x1xf32>
    %76 = arith.mulf %71, %75 : vector<8x1xf32>
    %cst_34 = arith.constant 6.250000e-02 : f32
    %77 = vector.broadcast %cst_34 : f32 to vector<8x1xf32>
    %78 = arith.mulf %74, %77 : vector<8x1xf32>
    %79 = arith.mulf %76, %76 : vector<8x1xf32>
    %80 = arith.subf %78, %79 : vector<8x1xf32>
    %81 = tpu.concatenate %76, %80 in 1 : vector<8x1xf32>, vector<8x1xf32> -> vector<8x2xf32>
    %cst_35 = arith.constant dense<0.000000e+00> : vector<8x2xf32>
    %82 = tpu.matmul %0, %81, %cst_35 {dimension_numbers = #tpu.dot_dimension_numbers<[1], [0], [0], [1], [0, 0, 1, 1], [], []>, precision = #tpu.contract_precision<fp32>} : vector<8x8xf32>, vector<8x2xf32>, vector<8x2xf32> -> vector<8x2xf32>
    %83 = vector.extract_strided_slice %82 {offsets = [0, 0], sizes = [8, 1], strides = [1, 1]} : vector<8x2xf32> to vector<8x1xf32>
    %84 = vector.extract_strided_slice %82 {offsets = [0, 1], sizes = [8, 1], strides = [1, 1]} : vector<8x2xf32> to vector<8x1xf32>
    %cst_36 = arith.constant 9.99999974E-6 : f32
    %85 = vector.broadcast %cst_36 : f32 to vector<8x1xf32>
    %86 = arith.addf %84, %85 : vector<8x1xf32>
    %87 = math.rsqrt %86 : vector<8x1xf32>
    %88 = vector.broadcast %83 : vector<8x1xf32> to vector<8x16xf32>
    %89 = arith.subf %65, %88 : vector<8x16xf32>
    %90 = vector.broadcast %87 : vector<8x1xf32> to vector<8x16xf32>
    %91 = arith.mulf %89, %90 : vector<8x16xf32>
    %92 = vector.broadcast %3 : vector<8x1xf32> to vector<8x16xf32>
    %93 = arith.mulf %91, %92 : vector<8x16xf32>
    %94 = vector.broadcast %4 : vector<8x1xf32> to vector<8x16xf32>
    %95 = arith.addf %93, %94 : vector<8x16xf32>
    %cst_37 = arith.constant 0.000000e+00 : f32
    %96 = vector.broadcast %cst_37 : f32 to vector<8x16xf32>
    %97 = arith.maximumf %95, %96 : vector<8x16xf32>
    %cst_38 = arith.constant 0.000000e+00 : f32
    %98 = vector.broadcast %cst_38 : f32 to vector<8x16xf32>
    %cst_39 = arith.constant 0.000000e+00 : f32
    %99 = vector.broadcast %cst_39 : f32 to vector<8x1xf32>
    %100 = vector.extract_strided_slice %97 {offsets = [0, 0], sizes = [8, 15], strides = [1, 1]} : vector<8x16xf32> to vector<8x15xf32>
    %101 = tpu.concatenate %99, %100 in 1 : vector<8x1xf32>, vector<8x15xf32> -> vector<8x16xf32>
    %102 = arith.truncf %101 : vector<8x16xf32> to vector<8x16xbf16>
    %c0_40 = arith.constant 0 : index
    %c0_41 = arith.constant 0 : index
    %c0_42 = arith.constant 0 : index
    %103 = vector.load %arg3[%c0_40, %c0_41, %c0_42] : memref<3x8x8xbf16, #tpu.memory_space<vmem>>, vector<1x8x8xbf16>
    %104 = vector.shape_cast %103 : vector<1x8x8xbf16> to vector<8x8xbf16>
    %cst_43 = arith.constant dense<0.000000e+00> : vector<8x16xf32>
    %105 = tpu.matmul %104, %102, %cst_43 {dimension_numbers = #tpu.dot_dimension_numbers<[1], [0], [0], [1], [0, 0, 1, 1], [], []>} : vector<8x8xbf16>, vector<8x16xbf16>, vector<8x16xf32> -> vector<8x16xf32>
    %106 = arith.addf %98, %105 : vector<8x16xf32>
    %107 = arith.truncf %97 : vector<8x16xf32> to vector<8x16xbf16>
    %c1_44 = arith.constant 1 : index
    %c0_45 = arith.constant 0 : index
    %c0_46 = arith.constant 0 : index
    %108 = vector.load %arg3[%c1_44, %c0_45, %c0_46] : memref<3x8x8xbf16, #tpu.memory_space<vmem>>, vector<1x8x8xbf16>
    %109 = vector.shape_cast %108 : vector<1x8x8xbf16> to vector<8x8xbf16>
    %cst_47 = arith.constant dense<0.000000e+00> : vector<8x16xf32>
    %110 = tpu.matmul %109, %107, %cst_47 {dimension_numbers = #tpu.dot_dimension_numbers<[1], [0], [0], [1], [0, 0, 1, 1], [], []>} : vector<8x8xbf16>, vector<8x16xbf16>, vector<8x16xf32> -> vector<8x16xf32>
    %111 = arith.addf %106, %110 : vector<8x16xf32>
    %cst_48 = arith.constant 0.000000e+00 : f32
    %112 = vector.broadcast %cst_48 : f32 to vector<8x1xf32>
    %113 = vector.extract_strided_slice %97 {offsets = [0, 1], sizes = [8, 15], strides = [1, 1]} : vector<8x16xf32> to vector<8x15xf32>
    %114 = tpu.concatenate %113, %112 in 1 : vector<8x15xf32>, vector<8x1xf32> -> vector<8x16xf32>
    %115 = arith.truncf %114 : vector<8x16xf32> to vector<8x16xbf16>
    %c2_49 = arith.constant 2 : index
    %c0_50 = arith.constant 0 : index
    %c0_51 = arith.constant 0 : index
    %116 = vector.load %arg3[%c2_49, %c0_50, %c0_51] : memref<3x8x8xbf16, #tpu.memory_space<vmem>>, vector<1x8x8xbf16>
    %117 = vector.shape_cast %116 : vector<1x8x8xbf16> to vector<8x8xbf16>
    %cst_52 = arith.constant dense<0.000000e+00> : vector<8x16xf32>
    %118 = tpu.matmul %117, %115, %cst_52 {dimension_numbers = #tpu.dot_dimension_numbers<[1], [0], [0], [1], [0, 0, 1, 1], [], []>} : vector<8x8xbf16>, vector<8x16xbf16>, vector<8x16xf32> -> vector<8x16xf32>
    %119 = arith.addf %111, %118 : vector<8x16xf32>
    %120 = arith.mulf %119, %119 : vector<8x16xf32>
    %121 = tpu.concatenate %119, %120 in 1 : vector<8x16xf32>, vector<8x16xf32> -> vector<8x32xf32>
    %cst_53 = arith.constant dense<0.000000e+00> : vector<8x32xf32>
    %122 = tpu.matmul %1, %121, %cst_53 {dimension_numbers = #tpu.dot_dimension_numbers<[1], [0], [0], [1], [0, 0, 1, 1], [], []>, precision = #tpu.contract_precision<fp32>} : vector<8x8xf32>, vector<8x32xf32>, vector<8x32xf32> -> vector<8x32xf32>
    %123 = vector.extract_strided_slice %122 {offsets = [0, 0], sizes = [8, 16], strides = [1, 1]} : vector<8x32xf32> to vector<8x16xf32>
    %cst_54 = arith.constant dense<0.000000e+00> : vector<8xf32>
    %124 = vector.multi_reduction <add>, %123, %cst_54 [1] : vector<8x16xf32> to vector<8xf32>
    %125 = vector.shape_cast %124 : vector<8xf32> to vector<8x1xf32>
    %126 = vector.extract_strided_slice %122 {offsets = [0, 16], sizes = [8, 16], strides = [1, 1]} : vector<8x32xf32> to vector<8x16xf32>
    %cst_55 = arith.constant dense<0.000000e+00> : vector<8xf32>
    %127 = vector.multi_reduction <add>, %126, %cst_55 [1] : vector<8x16xf32> to vector<8xf32>
    %128 = vector.shape_cast %127 : vector<8xf32> to vector<8x1xf32>
    %cst_56 = arith.constant 6.250000e-02 : f32
    %129 = vector.broadcast %cst_56 : f32 to vector<8x1xf32>
    %130 = arith.mulf %125, %129 : vector<8x1xf32>
    %cst_57 = arith.constant 6.250000e-02 : f32
    %131 = vector.broadcast %cst_57 : f32 to vector<8x1xf32>
    %132 = arith.mulf %128, %131 : vector<8x1xf32>
    %133 = arith.mulf %130, %130 : vector<8x1xf32>
    %134 = arith.subf %132, %133 : vector<8x1xf32>
    %135 = tpu.concatenate %130, %134 in 1 : vector<8x1xf32>, vector<8x1xf32> -> vector<8x2xf32>
    %cst_58 = arith.constant dense<0.000000e+00> : vector<8x2xf32>
    %136 = tpu.matmul %0, %135, %cst_58 {dimension_numbers = #tpu.dot_dimension_numbers<[1], [0], [0], [1], [0, 0, 1, 1], [], []>, precision = #tpu.contract_precision<fp32>} : vector<8x8xf32>, vector<8x2xf32>, vector<8x2xf32> -> vector<8x2xf32>
    %137 = vector.extract_strided_slice %136 {offsets = [0, 0], sizes = [8, 1], strides = [1, 1]} : vector<8x2xf32> to vector<8x1xf32>
    %138 = vector.extract_strided_slice %136 {offsets = [0, 1], sizes = [8, 1], strides = [1, 1]} : vector<8x2xf32> to vector<8x1xf32>
    %cst_59 = arith.constant 9.99999974E-6 : f32
    %139 = vector.broadcast %cst_59 : f32 to vector<8x1xf32>
    %140 = arith.addf %138, %139 : vector<8x1xf32>
    %141 = math.rsqrt %140 : vector<8x1xf32>
    %142 = vector.broadcast %137 : vector<8x1xf32> to vector<8x16xf32>
    %143 = arith.subf %119, %142 : vector<8x16xf32>
    %144 = vector.broadcast %141 : vector<8x1xf32> to vector<8x16xf32>
    %145 = arith.mulf %143, %144 : vector<8x16xf32>
    %146 = vector.broadcast %5 : vector<8x1xf32> to vector<8x16xf32>
    %147 = arith.mulf %145, %146 : vector<8x16xf32>
    %148 = vector.broadcast %6 : vector<8x1xf32> to vector<8x16xf32>
    %149 = arith.addf %147, %148 : vector<8x16xf32>
    %150 = arith.addf %149, %43 : vector<8x16xf32>
    %cst_60 = arith.constant 0.000000e+00 : f32
    %151 = vector.broadcast %cst_60 : f32 to vector<8x16xf32>
    %152 = arith.maximumf %150, %151 : vector<8x16xf32>
    %c0_61 = arith.constant 0 : index
    %c0_62 = arith.constant 0 : index
    %c0_63 = arith.constant 0 : index
    %153 = vector.load %arg8[%c0_61, %c0_62, %c0_63] : memref<2x8x16xf32, #tpu.memory_space<vmem>>, vector<1x8x16xf32>
    %154 = vector.shape_cast %153 : vector<1x8x16xf32> to vector<8x16xf32>
    %155 = vector.shape_cast %152 : vector<8x16xf32> to vector<1x8x16xf32>
    tpu.vector_store %arg8[%c0_61, %c0_62, %c0_63], %155 {strides = array<i32>} : memref<2x8x16xf32, #tpu.memory_space<vmem>>, vector<1x8x16xf32>,
    %c1_64 = arith.constant 1 : index
    %c0_65 = arith.constant 0 : index
    %c0_66 = arith.constant 0 : index
    %156 = vector.load %arg1[%c1_64, %c0_65, %c0_66] : memref<2x4x16xf32, #tpu.memory_space<vmem>>, vector<1x4x16xf32>
    %157 = vector.shape_cast %156 : vector<1x4x16xf32> to vector<4x16xf32>
    %158 = arith.truncf %157 : vector<4x16xf32> to vector<4x16xbf16>
    %cst_67 = arith.constant dense<0.000000e+00> : vector<8x16xf32>
    %159 = tpu.matmul %9, %158, %cst_67 {dimension_numbers = #tpu.dot_dimension_numbers<[1], [0], [0], [1], [0, 0, 1, 1], [], []>} : vector<8x4xbf16>, vector<4x16xbf16>, vector<8x16xf32> -> vector<8x16xf32>
    %160 = arith.mulf %159, %159 : vector<8x16xf32>
    %161 = tpu.concatenate %159, %160 in 1 : vector<8x16xf32>, vector<8x16xf32> -> vector<8x32xf32>
    %cst_68 = arith.constant dense<0.000000e+00> : vector<8x32xf32>
    %162 = tpu.matmul %1, %161, %cst_68 {dimension_numbers = #tpu.dot_dimension_numbers<[1], [0], [0], [1], [0, 0, 1, 1], [], []>, precision = #tpu.contract_precision<fp32>} : vector<8x8xf32>, vector<8x32xf32>, vector<8x32xf32> -> vector<8x32xf32>
    %163 = vector.extract_strided_slice %162 {offsets = [0, 0], sizes = [8, 16], strides = [1, 1]} : vector<8x32xf32> to vector<8x16xf32>
    %cst_69 = arith.constant dense<0.000000e+00> : vector<8xf32>
    %164 = vector.multi_reduction <add>, %163, %cst_69 [1] : vector<8x16xf32> to vector<8xf32>
    %165 = vector.shape_cast %164 : vector<8xf32> to vector<8x1xf32>
    %166 = vector.extract_strided_slice %162 {offsets = [0, 16], sizes = [8, 16], strides = [1, 1]} : vector<8x32xf32> to vector<8x16xf32>
    %cst_70 = arith.constant dense<0.000000e+00> : vector<8xf32>
    %167 = vector.multi_reduction <add>, %166, %cst_70 [1] : vector<8x16xf32> to vector<8xf32>
    %168 = vector.shape_cast %167 : vector<8xf32> to vector<8x1xf32>
    %cst_71 = arith.constant 6.250000e-02 : f32
    %169 = vector.broadcast %cst_71 : f32 to vector<8x1xf32>
    %170 = arith.mulf %165, %169 : vector<8x1xf32>
    %cst_72 = arith.constant 6.250000e-02 : f32
    %171 = vector.broadcast %cst_72 : f32 to vector<8x1xf32>
    %172 = arith.mulf %168, %171 : vector<8x1xf32>
    %173 = arith.mulf %170, %170 : vector<8x1xf32>
    %174 = arith.subf %172, %173 : vector<8x1xf32>
    %175 = tpu.concatenate %170, %174 in 1 : vector<8x1xf32>, vector<8x1xf32> -> vector<8x2xf32>
    %cst_73 = arith.constant dense<0.000000e+00> : vector<8x2xf32>
    %176 = tpu.matmul %0, %175, %cst_73 {dimension_numbers = #tpu.dot_dimension_numbers<[1], [0], [0], [1], [0, 0, 1, 1], [], []>, precision = #tpu.contract_precision<fp32>} : vector<8x8xf32>, vector<8x2xf32>, vector<8x2xf32> -> vector<8x2xf32>
    %177 = vector.extract_strided_slice %176 {offsets = [0, 0], sizes = [8, 1], strides = [1, 1]} : vector<8x2xf32> to vector<8x1xf32>
    %178 = vector.extract_strided_slice %176 {offsets = [0, 1], sizes = [8, 1], strides = [1, 1]} : vector<8x2xf32> to vector<8x1xf32>
    %cst_74 = arith.constant 9.99999974E-6 : f32
    %179 = vector.broadcast %cst_74 : f32 to vector<8x1xf32>
    %180 = arith.addf %178, %179 : vector<8x1xf32>
    %181 = math.rsqrt %180 : vector<8x1xf32>
    %182 = vector.broadcast %177 : vector<8x1xf32> to vector<8x16xf32>
    %183 = arith.subf %159, %182 : vector<8x16xf32>
    %184 = vector.broadcast %181 : vector<8x1xf32> to vector<8x16xf32>
    %185 = arith.mulf %183, %184 : vector<8x16xf32>
    %186 = vector.broadcast %7 : vector<8x1xf32> to vector<8x16xf32>
    %187 = arith.mulf %185, %186 : vector<8x16xf32>
    %188 = vector.broadcast %8 : vector<8x1xf32> to vector<8x16xf32>
    %189 = arith.addf %187, %188 : vector<8x16xf32>
    %cst_75 = arith.constant 0.000000e+00 : f32
    %190 = vector.broadcast %cst_75 : f32 to vector<8x16xf32>
    %cst_76 = arith.constant 0.000000e+00 : f32
    %191 = vector.broadcast %cst_76 : f32 to vector<4x1xf32>
    %192 = vector.extract_strided_slice %157 {offsets = [0, 0], sizes = [4, 15], strides = [1, 1]} : vector<4x16xf32> to vector<4x15xf32>
    %193 = tpu.concatenate %191, %192 in 1 : vector<4x1xf32>, vector<4x15xf32> -> vector<4x16xf32>
    %194 = arith.truncf %193 : vector<4x16xf32> to vector<4x16xbf16>
    %c0_77 = arith.constant 0 : index
    %c0_78 = arith.constant 0 : index
    %c0_79 = arith.constant 0 : index
    %195 = vector.load %arg2[%c0_77, %c0_78, %c0_79] : memref<3x8x4xbf16, #tpu.memory_space<vmem>>, vector<1x8x4xbf16>
    %196 = vector.shape_cast %195 : vector<1x8x4xbf16> to vector<8x4xbf16>
    %cst_80 = arith.constant dense<0.000000e+00> : vector<8x16xf32>
    %197 = tpu.matmul %196, %194, %cst_80 {dimension_numbers = #tpu.dot_dimension_numbers<[1], [0], [0], [1], [0, 0, 1, 1], [], []>} : vector<8x4xbf16>, vector<4x16xbf16>, vector<8x16xf32> -> vector<8x16xf32>
    %198 = arith.addf %190, %197 : vector<8x16xf32>
    %199 = arith.truncf %157 : vector<4x16xf32> to vector<4x16xbf16>
    %c1_81 = arith.constant 1 : index
    %c0_82 = arith.constant 0 : index
    %c0_83 = arith.constant 0 : index
    %200 = vector.load %arg2[%c1_81, %c0_82, %c0_83] : memref<3x8x4xbf16, #tpu.memory_space<vmem>>, vector<1x8x4xbf16>
    %201 = vector.shape_cast %200 : vector<1x8x4xbf16> to vector<8x4xbf16>
    %cst_84 = arith.constant dense<0.000000e+00> : vector<8x16xf32>
    %202 = tpu.matmul %201, %199, %cst_84 {dimension_numbers = #tpu.dot_dimension_numbers<[1], [0], [0], [1], [0, 0, 1, 1], [], []>} : vector<8x4xbf16>, vector<4x16xbf16>, vector<8x16xf32> -> vector<8x16xf32>
    %203 = arith.addf %198, %202 : vector<8x16xf32>
    %cst_85 = arith.constant 0.000000e+00 : f32
    %204 = vector.broadcast %cst_85 : f32 to vector<4x1xf32>
    %205 = vector.extract_strided_slice %157 {offsets = [0, 1], sizes = [4, 15], strides = [1, 1]} : vector<4x16xf32> to vector<4x15xf32>
    %206 = tpu.concatenate %205, %204 in 1 : vector<4x15xf32>, vector<4x1xf32> -> vector<4x16xf32>
    %207 = arith.truncf %206 : vector<4x16xf32> to vector<4x16xbf16>
    %c2_86 = arith.constant 2 : index
    %c0_87 = arith.constant 0 : index
    %c0_88 = arith.constant 0 : index
    %208 = vector.load %arg2[%c2_86, %c0_87, %c0_88] : memref<3x8x4xbf16, #tpu.memory_space<vmem>>, vector<1x8x4xbf16>
    %209 = vector.shape_cast %208 : vector<1x8x4xbf16> to vector<8x4xbf16>
    %cst_89 = arith.constant dense<0.000000e+00> : vector<8x16xf32>
    %210 = tpu.matmul %209, %207, %cst_89 {dimension_numbers = #tpu.dot_dimension_numbers<[1], [0], [0], [1], [0, 0, 1, 1], [], []>} : vector<8x4xbf16>, vector<4x16xbf16>, vector<8x16xf32> -> vector<8x16xf32>
    %211 = arith.addf %203, %210 : vector<8x16xf32>
    %212 = arith.mulf %211, %211 : vector<8x16xf32>
    %213 = tpu.concatenate %211, %212 in 1 : vector<8x16xf32>, vector<8x16xf32> -> vector<8x32xf32>
    %cst_90 = arith.constant dense<0.000000e+00> : vector<8x32xf32>
    %214 = tpu.matmul %1, %213, %cst_90 {dimension_numbers = #tpu.dot_dimension_numbers<[1], [0], [0], [1], [0, 0, 1, 1], [], []>, precision = #tpu.contract_precision<fp32>} : vector<8x8xf32>, vector<8x32xf32>, vector<8x32xf32> -> vector<8x32xf32>
    %215 = vector.extract_strided_slice %214 {offsets = [0, 0], sizes = [8, 16], strides = [1, 1]} : vector<8x32xf32> to vector<8x16xf32>
    %cst_91 = arith.constant dense<0.000000e+00> : vector<8xf32>
    %216 = vector.multi_reduction <add>, %215, %cst_91 [1] : vector<8x16xf32> to vector<8xf32>
    %217 = vector.shape_cast %216 : vector<8xf32> to vector<8x1xf32>
    %218 = vector.extract_strided_slice %214 {offsets = [0, 16], sizes = [8, 16], strides = [1, 1]} : vector<8x32xf32> to vector<8x16xf32>
    %cst_92 = arith.constant dense<0.000000e+00> : vector<8xf32>
    %219 = vector.multi_reduction <add>, %218, %cst_92 [1] : vector<8x16xf32> to vector<8xf32>
    %220 = vector.shape_cast %219 : vector<8xf32> to vector<8x1xf32>
    %cst_93 = arith.constant 6.250000e-02 : f32
    %221 = vector.broadcast %cst_93 : f32 to vector<8x1xf32>
    %222 = arith.mulf %217, %221 : vector<8x1xf32>
    %cst_94 = arith.constant 6.250000e-02 : f32
    %223 = vector.broadcast %cst_94 : f32 to vector<8x1xf32>
    %224 = arith.mulf %220, %223 : vector<8x1xf32>
    %225 = arith.mulf %222, %222 : vector<8x1xf32>
    %226 = arith.subf %224, %225 : vector<8x1xf32>
    %227 = tpu.concatenate %222, %226 in 1 : vector<8x1xf32>, vector<8x1xf32> -> vector<8x2xf32>
    %cst_95 = arith.constant dense<0.000000e+00> : vector<8x2xf32>
    %228 = tpu.matmul %0, %227, %cst_95 {dimension_numbers = #tpu.dot_dimension_numbers<[1], [0], [0], [1], [0, 0, 1, 1], [], []>, precision = #tpu.contract_precision<fp32>} : vector<8x8xf32>, vector<8x2xf32>, vector<8x2xf32> -> vector<8x2xf32>
    %229 = vector.extract_strided_slice %228 {offsets = [0, 0], sizes = [8, 1], strides = [1, 1]} : vector<8x2xf32> to vector<8x1xf32>
    %230 = vector.extract_strided_slice %228 {offsets = [0, 1], sizes = [8, 1], strides = [1, 1]} : vector<8x2xf32> to vector<8x1xf32>
    %cst_96 = arith.constant 9.99999974E-6 : f32
    %231 = vector.broadcast %cst_96 : f32 to vector<8x1xf32>
    %232 = arith.addf %230, %231 : vector<8x1xf32>
    %233 = math.rsqrt %232 : vector<8x1xf32>
    %234 = vector.broadcast %229 : vector<8x1xf32> to vector<8x16xf32>
    %235 = arith.subf %211, %234 : vector<8x16xf32>
    %236 = vector.broadcast %233 : vector<8x1xf32> to vector<8x16xf32>
    %237 = arith.mulf %235, %236 : vector<8x16xf32>
    %238 = vector.broadcast %3 : vector<8x1xf32> to vector<8x16xf32>
    %239 = arith.mulf %237, %238 : vector<8x16xf32>
    %240 = vector.broadcast %4 : vector<8x1xf32> to vector<8x16xf32>
    %241 = arith.addf %239, %240 : vector<8x16xf32>
    %cst_97 = arith.constant 0.000000e+00 : f32
    %242 = vector.broadcast %cst_97 : f32 to vector<8x16xf32>
    %243 = arith.maximumf %241, %242 : vector<8x16xf32>
    %cst_98 = arith.constant 0.000000e+00 : f32
    %244 = vector.broadcast %cst_98 : f32 to vector<8x16xf32>
    %cst_99 = arith.constant 0.000000e+00 : f32
    %245 = vector.broadcast %cst_99 : f32 to vector<8x1xf32>
    %246 = vector.extract_strided_slice %243 {offsets = [0, 0], sizes = [8, 15], strides = [1, 1]} : vector<8x16xf32> to vector<8x15xf32>
    %247 = tpu.concatenate %245, %246 in 1 : vector<8x1xf32>, vector<8x15xf32> -> vector<8x16xf32>
    %248 = arith.truncf %247 : vector<8x16xf32> to vector<8x16xbf16>
    %c0_100 = arith.constant 0 : index
    %c0_101 = arith.constant 0 : index
    %c0_102 = arith.constant 0 : index
    %249 = vector.load %arg3[%c0_100, %c0_101, %c0_102] : memref<3x8x8xbf16, #tpu.memory_space<vmem>>, vector<1x8x8xbf16>
    %250 = vector.shape_cast %249 : vector<1x8x8xbf16> to vector<8x8xbf16>
    %cst_103 = arith.constant dense<0.000000e+00> : vector<8x16xf32>
    %251 = tpu.matmul %250, %248, %cst_103 {dimension_numbers = #tpu.dot_dimension_numbers<[1], [0], [0], [1], [0, 0, 1, 1], [], []>} : vector<8x8xbf16>, vector<8x16xbf16>, vector<8x16xf32> -> vector<8x16xf32>
    %252 = arith.addf %244, %251 : vector<8x16xf32>
    %253 = arith.truncf %243 : vector<8x16xf32> to vector<8x16xbf16>
    %c1_104 = arith.constant 1 : index
    %c0_105 = arith.constant 0 : index
    %c0_106 = arith.constant 0 : index
    %254 = vector.load %arg3[%c1_104, %c0_105, %c0_106] : memref<3x8x8xbf16, #tpu.memory_space<vmem>>, vector<1x8x8xbf16>
    %255 = vector.shape_cast %254 : vector<1x8x8xbf16> to vector<8x8xbf16>
    %cst_107 = arith.constant dense<0.000000e+00> : vector<8x16xf32>
    %256 = tpu.matmul %255, %253, %cst_107 {dimension_numbers = #tpu.dot_dimension_numbers<[1], [0], [0], [1], [0, 0, 1, 1], [], []>} : vector<8x8xbf16>, vector<8x16xbf16>, vector<8x16xf32> -> vector<8x16xf32>
    %257 = arith.addf %252, %256 : vector<8x16xf32>
    %cst_108 = arith.constant 0.000000e+00 : f32
    %258 = vector.broadcast %cst_108 : f32 to vector<8x1xf32>
    %259 = vector.extract_strided_slice %243 {offsets = [0, 1], sizes = [8, 15], strides = [1, 1]} : vector<8x16xf32> to vector<8x15xf32>
    %260 = tpu.concatenate %259, %258 in 1 : vector<8x15xf32>, vector<8x1xf32> -> vector<8x16xf32>
    %261 = arith.truncf %260 : vector<8x16xf32> to vector<8x16xbf16>
    %c2_109 = arith.constant 2 : index
    %c0_110 = arith.constant 0 : index
    %c0_111 = arith.constant 0 : index
    %262 = vector.load %arg3[%c2_109, %c0_110, %c0_111] : memref<3x8x8xbf16, #tpu.memory_space<vmem>>, vector<1x8x8xbf16>
    %263 = vector.shape_cast %262 : vector<1x8x8xbf16> to vector<8x8xbf16>
    %cst_112 = arith.constant dense<0.000000e+00> : vector<8x16xf32>
    %264 = tpu.matmul %263, %261, %cst_112 {dimension_numbers = #tpu.dot_dimension_numbers<[1], [0], [0], [1], [0, 0, 1, 1], [], []>} : vector<8x8xbf16>, vector<8x16xbf16>, vector<8x16xf32> -> vector<8x16xf32>
    %265 = arith.addf %257, %264 : vector<8x16xf32>
    %266 = arith.mulf %265, %265 : vector<8x16xf32>
    %267 = tpu.concatenate %265, %266 in 1 : vector<8x16xf32>, vector<8x16xf32> -> vector<8x32xf32>
    %cst_113 = arith.constant dense<0.000000e+00> : vector<8x32xf32>
    %268 = tpu.matmul %1, %267, %cst_113 {dimension_numbers = #tpu.dot_dimension_numbers<[1], [0], [0], [1], [0, 0, 1, 1], [], []>, precision = #tpu.contract_precision<fp32>} : vector<8x8xf32>, vector<8x32xf32>, vector<8x32xf32> -> vector<8x32xf32>
    %269 = vector.extract_strided_slice %268 {offsets = [0, 0], sizes = [8, 16], strides = [1, 1]} : vector<8x32xf32> to vector<8x16xf32>
    %cst_114 = arith.constant dense<0.000000e+00> : vector<8xf32>
    %270 = vector.multi_reduction <add>, %269, %cst_114 [1] : vector<8x16xf32> to vector<8xf32>
    %271 = vector.shape_cast %270 : vector<8xf32> to vector<8x1xf32>
    %272 = vector.extract_strided_slice %268 {offsets = [0, 16], sizes = [8, 16], strides = [1, 1]} : vector<8x32xf32> to vector<8x16xf32>
    %cst_115 = arith.constant dense<0.000000e+00> : vector<8xf32>
    %273 = vector.multi_reduction <add>, %272, %cst_115 [1] : vector<8x16xf32> to vector<8xf32>
    %274 = vector.shape_cast %273 : vector<8xf32> to vector<8x1xf32>
    %cst_116 = arith.constant 6.250000e-02 : f32
    %275 = vector.broadcast %cst_116 : f32 to vector<8x1xf32>
    %276 = arith.mulf %271, %275 : vector<8x1xf32>
    %cst_117 = arith.constant 6.250000e-02 : f32
    %277 = vector.broadcast %cst_117 : f32 to vector<8x1xf32>
    %278 = arith.mulf %274, %277 : vector<8x1xf32>
    %279 = arith.mulf %276, %276 : vector<8x1xf32>
    %280 = arith.subf %278, %279 : vector<8x1xf32>
    %281 = tpu.concatenate %276, %280 in 1 : vector<8x1xf32>, vector<8x1xf32> -> vector<8x2xf32>
    %cst_118 = arith.constant dense<0.000000e+00> : vector<8x2xf32>
    %282 = tpu.matmul %0, %281, %cst_118 {dimension_numbers = #tpu.dot_dimension_numbers<[1], [0], [0], [1], [0, 0, 1, 1], [], []>, precision = #tpu.contract_precision<fp32>} : vector<8x8xf32>, vector<8x2xf32>, vector<8x2xf32> -> vector<8x2xf32>
    %283 = vector.extract_strided_slice %282 {offsets = [0, 0], sizes = [8, 1], strides = [1, 1]} : vector<8x2xf32> to vector<8x1xf32>
    %284 = vector.extract_strided_slice %282 {offsets = [0, 1], sizes = [8, 1], strides = [1, 1]} : vector<8x2xf32> to vector<8x1xf32>
    %cst_119 = arith.constant 9.99999974E-6 : f32
    %285 = vector.broadcast %cst_119 : f32 to vector<8x1xf32>
    %286 = arith.addf %284, %285 : vector<8x1xf32>
    %287 = math.rsqrt %286 : vector<8x1xf32>
    %288 = vector.broadcast %283 : vector<8x1xf32> to vector<8x16xf32>
    %289 = arith.subf %265, %288 : vector<8x16xf32>
    %290 = vector.broadcast %287 : vector<8x1xf32> to vector<8x16xf32>
    %291 = arith.mulf %289, %290 : vector<8x16xf32>
    %292 = vector.broadcast %5 : vector<8x1xf32> to vector<8x16xf32>
    %293 = arith.mulf %291, %292 : vector<8x16xf32>
    %294 = vector.broadcast %6 : vector<8x1xf32> to vector<8x16xf32>
    %295 = arith.addf %293, %294 : vector<8x16xf32>
    %296 = arith.addf %295, %189 : vector<8x16xf32>
    %cst_120 = arith.constant 0.000000e+00 : f32
    %297 = vector.broadcast %cst_120 : f32 to vector<8x16xf32>
    %298 = arith.maximumf %296, %297 : vector<8x16xf32>
    %c1_121 = arith.constant 1 : index
    %c0_122 = arith.constant 0 : index
    %c0_123 = arith.constant 0 : index
    %299 = vector.load %arg8[%c1_121, %c0_122, %c0_123] : memref<2x8x16xf32, #tpu.memory_space<vmem>>, vector<1x8x16xf32>
    %300 = vector.shape_cast %299 : vector<1x8x16xf32> to vector<8x16xf32>
    %301 = vector.shape_cast %298 : vector<8x16xf32> to vector<1x8x16xf32>
    tpu.vector_store %arg8[%c1_121, %c0_122, %c0_123], %301 {strides = array<i32>} : memref<2x8x16xf32, #tpu.memory_space<vmem>>, vector<1x8x16xf32>,
    return
  }
  func.func @transform_0(%arg0: i32) -> (i32, i32, i32) {
    %c0_i32 = arith.constant 0 : i32
    %c0_i32_0 = arith.constant 0 : i32
    %c0_i32_1 = arith.constant 0 : i32
    return %arg0, %c0_i32, %c0_i32_0 : i32, i32, i32
  }
  func.func @transform_1(%arg0: i32) -> (i32, i32, i32) {
    %c0_i32 = arith.constant 0 : i32
    %c0_i32_0 = arith.constant 0 : i32
    %c0_i32_1 = arith.constant 0 : i32
    %c0_i32_2 = arith.constant 0 : i32
    return %c0_i32, %c0_i32_0, %c0_i32_1 : i32, i32, i32
  }
  func.func @transform_2(%arg0: i32) -> (i32, i32, i32) {
    %c0_i32 = arith.constant 0 : i32
    %c0_i32_0 = arith.constant 0 : i32
    %c0_i32_1 = arith.constant 0 : i32
    %c0_i32_2 = arith.constant 0 : i32
    return %c0_i32, %c0_i32_0, %c0_i32_1 : i32, i32, i32
  }
  func.func @transform_3(%arg0: i32) -> (i32, i32) {
    %c0_i32 = arith.constant 0 : i32
    %c0_i32_0 = arith.constant 0 : i32
    %c0_i32_1 = arith.constant 0 : i32
    return %c0_i32, %c0_i32_0 : i32, i32
  }
  func.func @transform_4(%arg0: i32) -> (i32, i32) {
    %c0_i32 = arith.constant 0 : i32
    %c0_i32_0 = arith.constant 0 : i32
    %c0_i32_1 = arith.constant 0 : i32
    return %c0_i32, %c0_i32_0 : i32, i32
  }
  func.func @transform_5(%arg0: i32) -> (i32, i32) {
    %c0_i32 = arith.constant 0 : i32
    %c0_i32_0 = arith.constant 0 : i32
    %c0_i32_1 = arith.constant 0 : i32
    return %c0_i32, %c0_i32_0 : i32, i32
  }
  func.func @transform_6(%arg0: i32) -> (i32, i32) {
    %c0_i32 = arith.constant 0 : i32
    %c0_i32_0 = arith.constant 0 : i32
    %c0_i32_1 = arith.constant 0 : i32
    return %c0_i32, %c0_i32_0 : i32, i32
  }
  func.func @transform_7(%arg0: i32) -> (i32, i32, i32) {
    %c0_i32 = arith.constant 0 : i32
    %c0_i32_0 = arith.constant 0 : i32
    %c0_i32_1 = arith.constant 0 : i32
    return %arg0, %c0_i32, %c0_i32_0 : i32, i32, i32
  }
}

</mosaic_0001>

<bundles_post_ra>
// kernel: tpu_custom_call.1
= control target key start
LH: loop header
LB: loop body
LE: loop exit
PB: predicated region body
PF: predicated region fallthrough
CT: control target
= control target key end

     0   :  { %vm38_vm0 = vcmask 1041408   ;;  %v7231_v1 = vmov 0.0   ;;  %vm7232_vm1 = vmmov 0   ;;  %s7874_s0 = inlined_call_operand.vmem [shape: f32[2,4,16], index: 0, kind: input, shape index: {}]   ;;  %s7875_s1 = inlined_call_operand.vmem [shape: bf16[3,8,4], index: 1, kind: input, shape index: {}]   ;;  %s7876_s2 = inlined_call_operand.vmem [shape: bf16[3,8,8], index: 2, kind: input, shape index: {}]   ;;  %s7877_s3 = inlined_call_operand.vmem [shape: bf16[8,4], index: 3, kind: input, shape index: {}]   ;;  %s7878_s4 = inlined_call_operand.vmem [shape: f32[8,6], index: 4, kind: input, shape index: {}]   ;;  %s7879_s5 = inlined_call_operand.vmem [shape: f32[8,8], index: 5, kind: input, shape index: {}]   ;;  %s7880_s6 = inlined_call_operand.vmem [shape: f32[8,8], index: 6, kind: input, shape index: {}]   ;;  %s7881_s7 = inlined_call_operand.hbm [shape: f32[2,8,16], index: 7, kind: output, shape index: {}]  }
   0x1   :  { %v32_v0 = vld [vmem:[%s7874_s0] sm:$0xf]  ;;  %6570 = vmatprep.subr.bf16.mxu0 %v7231_v1  ;;  %6572 = vmatprep.mubr.msk.bf16.mxu0 %vm7232_vm1, %v7231_v1 }
   0x2   :  { %v33_v2 = vpack.c.bf16 %v32_v0, %v32_v0 }
   0x3   :  { %12 = vsyncpa [#allocation3], 0  ;;  %6576 = vmatprep.subr.mxu1 %v7231_v1  ;;  %6578 = vmatprep.mubr.msk.f32.mxu1 %vm7232_vm1, %v7231_v1  ;;  %v7299_v4 = vld [vmem:[%s7877_s3] sm:$0xf]  ;;  %vm34_vm2 = vcmask 31744   ;;  %s7233_s28 = smov 127  }
   0x4   :  { %v40_v3 = vsel %vm38_vm0, %v33_v2, 0  ;;  %1127 = vrot.lane.b32.xlu1 %v32_v0, %s7233_s28  ;;  %s7234_s3 = smov 16   ;;  %s7235_s29 = smov 1   ;;  %v29_v10 = vld [vmem:[%s7880_s6] sm:$0xff]  ;;  %vm89_vm3 = vcmask 64512   ;;  %vm87_vm4 = vcmask 130048  }
   0x5   :  { %6571 = vmatpush3.bf16.msra.mxu0 %v40_v3  ;;  %v91_v11 = vsel %vm89_vm3, %v29_v10, 0  ;;  %vm553_vm5 = vcmask 7168   ;;  %v6376_v27 = vld [vmem:[%s7875_s1 + $0x4] sm:$0xf]  ;;  %vm1130_vm6 = vcmask 121856   ;;  %s7236_s14 = smov 112  }
   0x6   :  { %6606 = vmatprep.subr.mxu0 %v7231_v1  ;;  %v7317_v12 = vand.u32 4294901760, %v91_v11  ;;  %v1035_v32 = vld [vmem:[%s7875_s1] sm:$0xf]  ;;  %v6379_v34 = vld [vmem:[%s7875_s1 + $0x8] sm:$0xf]  ;;  %vm2133_vm7 = vcmask 1043456  }
   0x7   :  { %v28_v45 = vld [vmem:[%s7879_s5] sm:$0xff] }
   0x8   :  { %6573 = vmatmul.mubr.msk.bf16.vlgmr.msra.gmra.mrb[0].mxu0 %vm34_vm2, %v7299_v4  ;;  %v7320_v13 = vsub.f32 %v91_v11, %v7317_v12  ;;  %v556_v46 = vsel %vm89_vm3, %v28_v45, 0 }
   0x9   :  { %6608 = vmatprep.mubr.msk.f32.mxu0 %vm7232_vm1, %v7231_v1  ;;  %v7392_v47 = vand.u32 4294901760, %v556_v46 }
   0xa   :  { %v7323_v14 = vand.u32 4294901760, %v7320_v13 }
   0xb   :  { %v7395_v48 = vsub.f32 %v556_v46, %v7392_v47 }
   0xc   :  { %v162_v15 = vsub.f32 %v7320_v13, %v7323_v14 }
   0xd   :  { %v7398_v51 = vand.u32 4294901760, %v7395_v48 }
   0xe   :  { %v7329_v18 = vand.u32 4294901760, %v162_v15 }
   0xf   :  { %v627_v55 = vsub.f32 %v7395_v48, %v7398_v51 }
  0x11   :  { %v7403_v58 = vand.u32 4294901760, %v627_v55 }
  0x76   :  { %v1128_v29 = vpop.permute.xlu1 %1127 }
  0x77   :  { %v1131_v30 = vsel %vm1130_vm6, %v1128_v29, 0.0 }
  0x78   :  { %v1132_v31 = vpack.c.bf16 %v1131_v30, %v1131_v30 }
  0x7a   :  { %v1139_v33 = vsel %vm38_vm0, %v1132_v31, 0 }
  0xdb   :  { %v7307_v5 = vpop.f32.mrb[0].mxu0 }
  0xdc   :  { %v6574_v6 = vpop.f32.mrb[1].mxu0  ;;  %v82_v7 = vmul.f32 %v7307_v5, %v7307_v5 }
  0xdd   :  { %v79_v8 = vpop.f32.mrb[2].mxu0 }
  0xde   :  { %84 = vrot.lane.b32.xlu0 %v82_v7, %s7234_s3  ;;  %v6575_v9 = vpop.f32.mrb[3].mxu0 }
  0xe2   :  { %1030 = vrot.lane.b32.xlu0 %v32_v0, %s7235_s29 }
 0x150   :  { %v85_v16 = vpop.permute.xlu0 %84 }
 0x151   :  { %v88_v17 = vsel %vm87_vm4, %v7307_v5, %v85_v16 }
 0x152   :  { %v94_v19 = vand.u32 4294901760, %v88_v17 }
 0x154   :  { %v171_v20 = vsub.f32 %v88_v17, %v94_v19  ;;  %6577 = vmatpush3.msra.mxu1 %v94_v19  ;;  %v1031_v24 = vpop.permute.xlu0 %1030 }
 0x155   :  { %6579 = vmatmul.mubr.f32.vlgmr.msra.gmra.mrb[0].mxu1 %v7329_v18  ;;  %6581 = vmatprep.subr.mxu1 %v7231_v1  ;;  %v1033_v25 = vsel %vm553_vm5, 0.0, %v1031_v24 }
 0x156   :  { %v172_v21 = vand.u32 4294901760, %v171_v20  ;;  %6583 = vmatprep.mubr.msk.f32.mxu1 %vm7232_vm1, %v7231_v1  ;;  %v1034_v26 = vpack.c.bf16 %v1033_v25, %v1033_v25 }
 0x158   :  { %v173_v22 = vsub.f32 %v171_v20, %v172_v21  ;;  %v1085_v28 = vsel %vm38_vm0, %v1034_v26, 0 }
 0x15a   :  { %v174_v23 = vand.u32 4294901760, %v173_v22 }
 0x15c   :  { %6582 = vmatpush3.msra.mxu1 %v174_v23 }
 0x15d   :  { %6584 = vmatmul.mubr.f32.vlgmr.msra.gmra.mrb[0].mxu1 %v7317_v12  ;;  %6586 = vmatprep.subr.mxu1 %v7231_v1 }
 0x15e   :  { %6587 = vmatpush3.msra.mxu1 %v171_v20  ;;  %6588 = vmatprep.mubr.msk.f32.mxu1 %vm7232_vm1, %v7231_v1 }
 0x15f   :  { %6591 = vmatprep.subr.mxu1 %v7231_v1 }
 0x165   :  { %6589 = vmatmul.mubr.f32.vlgmr.msra.gmra.mrb[0].mxu1 %v7320_v13 }
 0x166   :  { %6592 = vmatpush3.msra.mxu1 %v94_v19  ;;  %6593 = vmatprep.mubr.msk.f32.mxu1 %vm7232_vm1, %v7231_v1 }
 0x167   :  { %6596 = vmatprep.subr.mxu1 %v7231_v1 }
 0x16d   :  { %6594 = vmatmul.mubr.f32.vlgmr.msra.gmra.mrb[0].mxu1 %v7323_v14 }
 0x16e   :  { %6597 = vmatpush3.msra.mxu1 %v172_v21  ;;  %6598 = vmatprep.mubr.msk.f32.mxu1 %vm7232_vm1, %v7231_v1  ;;  %v7237_v21 = vmov 0  }
 0x16f   :  { %6601 = vmatprep.subr.mxu1 %v7231_v1  ;;  %7181 = vset.pattern.permute.xlu0 %v7237_v21 }
 0x170   :  { %7182 = vset.pattern.permute.xlu1 %v7237_v21 }
 0x175   :  { %6599 = vmatmul.mubr.f32.vlgmr.msra.gmra.mrb[0].mxu1 %v7317_v12 }
 0x176   :  { %6602 = vmatpush3.msra.mxu1 %v94_v19  ;;  %6603 = vmatprep.mubr.msk.f32.mxu1 %vm7232_vm1, %v7231_v1 }
 0x177   :  { %6636 = vmatprep.subr.bf16.mxu1 %v7231_v1 }
 0x17d   :  { %6604 = vmatmul.mubr.f32.vlgmr.msra.gmra.mrb[0].mxu1 %v7317_v12 }
 0x17e   :  { %6637 = vmatpush3.bf16.msra.mxu1 %v40_v3  ;;  %6638 = vmatprep.mubr.msk.bf16.mxu1 %vm7232_vm1, %v7231_v1 }
 0x17f   :  { %6642 = vmatprep.subr.bf16.mxu1 %v7231_v1 }
 0x181   :  { %6639 = vmatmul.mubr.msk.bf16.vlgmr.msra.gmra.mrb[4].mxu1 %vm34_vm2, %v6376_v27 }
 0x182   :  { %6643 = vmatpush3.bf16.msra.mxu1 %v1085_v28  ;;  %6644 = vmatprep.mubr.msk.bf16.mxu1 %vm7232_vm1, %v7231_v1 }
 0x183   :  { %6648 = vmatprep.subr.bf16.mxu1 %v7231_v1 }
 0x18d   :  { %6645 = vmatmul.mubr.msk.bf16.vlgmr.msra.gmra.mrb[4].mxu1 %vm34_vm2, %v1035_v32 }
 0x18e   :  { %6649 = vmatpush3.bf16.msra.mxu1 %v1139_v33  ;;  %6650 = vmatprep.mubr.msk.bf16.mxu1 %vm7232_vm1, %v7231_v1 }
 0x18f   :  { %6684 = vmatprep.subr.mxu1 %v7231_v1 }
 0x199   :  { %6651 = vmatmul.mubr.msk.bf16.vlgmr.msra.gmra.mrb[4].mxu1 %vm34_vm2, %v6379_v34  ;;  %v7490_v34 = vld [vmem:[%s7878_s4] sm:$0xff] }
 0x19a   :  { %6686 = vmatprep.mubr.msk.f32.mxu1 %vm7232_vm1, %v7231_v1 }
 0x250   :  { %v535_v35 = vpop.f32.mrb[0].mxu1 }
 0x251   :  { %543 = vrot.lane.b32.xlu1 %v535_v35, %s7236_s14  ;;  %v6605_v36 = vpop.f32.mrb[1].mxu1  ;;  %v539_v37 = vsel %vm87_vm4, %v535_v35, 0.0  ;;  %v7238_v35 = vmov 1  }
 0x252   :  { %540 = vadd.xlane.f32.xlu0 %v539_v37 }
 0x26c   :  { %v7382_v38 = vpop.f32.mrb[4].mxu1 }
 0x26d   :  { %v1182_v39 = vmul.f32 %v7382_v38, %v7382_v38  ;;  %v6652_v40 = vpop.f32.mrb[5].mxu1 }
 0x26e   :  { %v1178_v41 = vpop.f32.mrb[6].mxu1 }
 0x26f   :  { %1184 = vrot.lane.b32.xlu0 %v1182_v39, %s7234_s3  ;;  %v6653_v42 = vpop.f32.mrb[7].mxu1 }
 0x2c3   :  { %v544_v43 = vpop.permute.xlu1 %543 }
 0x2c4   :  { %v546_v44 = vsel %vm87_vm4, %v544_v43, 0.0 }
 0x2c5   :  { %547 = vadd.xlane.f32.xlu1 %v546_v44 }
 0x2df   :  { %v541_v49 = vpop.xlane.xlu0 %540 }
 0x2e0   :  { %v549_v50 = vmul.f32 0.0625, %v541_v49 }
 0x2e2   :  { %v551_v53 = vmul.f32 %v549_v50, %v549_v50 }
 0x2e3   :  { %v1185_v0 = vpop.permute.xlu0 %1184 }
 0x2e4   :  { %v1187_v2 = vsel %vm87_vm4, %v7382_v38, %v1185_v0 }
 0x2e5   :  { %v1189_v3 = vand.u32 4294901760, %v1187_v2 }
 0x2e7   :  { %v1266_v6 = vsub.f32 %v1187_v2, %v1189_v3  ;;  %v6384_v2 = vld [vmem:[%s7876_s2 + $0x8] sm:$0xf] }
 0x2e9   :  { %v1267_v7 = vand.u32 4294901760, %v1266_v6 }
 0x2eb   :  { %v1268_v8 = vsub.f32 %v1266_v6, %v1267_v7 }
 0x2ed   :  { %v1269_v9 = vand.u32 4294901760, %v1268_v8 }
 0x352   :  { %v548_v52 = vpop.xlane.xlu1 %547 }
 0x353   :  { %v550_v54 = vmul.f32 0.0625, %v548_v52 }
 0x355   :  { %v552_v56 = vsub.f32 %v550_v54, %v551_v53 }
 0x357   :  { %v554_v57 = vsel %vm553_vm5, %v549_v50, %v552_v56 }
 0x358   :  { %v559_v59 = vand.u32 4294901760, %v554_v57 }
 0x35a   :  { %6607 = vmatpush3.msra.mxu0 %v559_v59  ;;  %v636_v60 = vsub.f32 %v554_v57, %v559_v59 }
 0x35b   :  { %6609 = vmatmul.mubr.f32.vlgmr.msra.gmra.mrb[4].mxu0 %v7403_v58  ;;  %6611 = vmatprep.subr.mxu0 %v7231_v1 }
 0x35c   :  { %v637_v61 = vand.u32 4294901760, %v636_v60  ;;  %6613 = vmatprep.mubr.msk.f32.mxu0 %vm7232_vm1, %v7231_v1 }
 0x35e   :  { %v638_v62 = vsub.f32 %v636_v60, %v637_v61 }
 0x360   :  { %v639_v63 = vand.u32 4294901760, %v638_v62  ;;  %v2126_v62 = vld [vmem:[%s7876_s2] sm:$0xf] }
 0x362   :  { %6612 = vmatpush3.msra.mxu0 %v639_v63 }
 0x363   :  { %6614 = vmatmul.mubr.f32.vlgmr.msra.gmra.mrb[4].mxu0 %v7392_v47  ;;  %6616 = vmatprep.subr.mxu0 %v7231_v1 }
 0x364   :  { %6617 = vmatpush3.msra.mxu0 %v636_v60  ;;  %6618 = vmatprep.mubr.msk.f32.mxu0 %vm7232_vm1, %v7231_v1 }
 0x365   :  { %6621 = vmatprep.subr.mxu0 %v7231_v1 }
 0x36b   :  { %6619 = vmatmul.mubr.f32.vlgmr.msra.gmra.mrb[4].mxu0 %v7395_v48 }
 0x36c   :  { %6622 = vmatpush3.msra.mxu0 %v559_v59  ;;  %6623 = vmatprep.mubr.msk.f32.mxu0 %vm7232_vm1, %v7231_v1 }
 0x36d   :  { %6626 = vmatprep.subr.mxu0 %v7231_v1 }
 0x373   :  { %6624 = vmatmul.mubr.f32.vlgmr.msra.gmra.mrb[4].mxu0 %v7398_v51 }
 0x374   :  { %6627 = vmatpush3.msra.mxu0 %v637_v61  ;;  %6628 = vmatprep.mubr.msk.f32.mxu0 %vm7232_vm1, %v7231_v1 }
 0x375   :  { %6631 = vmatprep.subr.mxu0 %v7231_v1 }
 0x37b   :  { %6629 = vmatmul.mubr.f32.vlgmr.msra.gmra.mrb[4].mxu0 %v7392_v47 }
 0x37c   :  { %6632 = vmatpush3.msra.mxu0 %v559_v59  ;;  %6633 = vmatprep.mubr.msk.f32.mxu0 %vm7232_vm1, %v7231_v1 }
 0x37d   :  { %6654 = vmatprep.subr.mxu0 %v7231_v1 }
 0x383   :  { %6634 = vmatmul.mubr.f32.vlgmr.msra.gmra.mrb[4].mxu0 %v7392_v47 }
 0x384   :  { %6655 = vmatpush3.msra.mxu0 %v1189_v3  ;;  %6656 = vmatprep.mubr.msk.f32.mxu0 %vm7232_vm1, %v7231_v1 }
 0x385   :  { %6659 = vmatprep.subr.mxu0 %v7231_v1 }
 0x387   :  { %6657 = vmatmul.mubr.f32.vlgmr.msra.gmra.mrb[6].mxu0 %v7329_v18 }
 0x388   :  { %6660 = vmatpush3.msra.mxu0 %v1269_v9  ;;  %6661 = vmatprep.mubr.msk.f32.mxu0 %vm7232_vm1, %v7231_v1 }
 0x389   :  { %6664 = vmatprep.subr.mxu0 %v7231_v1 }
 0x38f   :  { %6662 = vmatmul.mubr.f32.vlgmr.msra.gmra.mrb[6].mxu0 %v7317_v12 }
 0x390   :  { %6665 = vmatpush3.msra.mxu0 %v1266_v6  ;;  %6666 = vmatprep.mubr.msk.f32.mxu0 %vm7232_vm1, %v7231_v1 }
 0x391   :  { %6669 = vmatprep.subr.mxu0 %v7231_v1 }
 0x397   :  { %6667 = vmatmul.mubr.f32.vlgmr.msra.gmra.mrb[6].mxu0 %v7320_v13 }
 0x398   :  { %6670 = vmatpush3.msra.mxu0 %v1189_v3  ;;  %6671 = vmatprep.mubr.msk.f32.mxu0 %vm7232_vm1, %v7231_v1 }
 0x399   :  { %6674 = vmatprep.subr.mxu0 %v7231_v1 }
 0x39f   :  { %6672 = vmatmul.mubr.f32.vlgmr.msra.gmra.mrb[6].mxu0 %v7323_v14 }
 0x3a0   :  { %6675 = vmatpush3.msra.mxu0 %v1267_v7  ;;  %6676 = vmatprep.mubr.msk.f32.mxu0 %vm7232_vm1, %v7231_v1 }
 0x3a1   :  { %6679 = vmatprep.subr.mxu0 %v7231_v1 }
 0x3a7   :  { %6677 = vmatmul.mubr.f32.vlgmr.msra.gmra.mrb[6].mxu0 %v7317_v12 }
 0x3a8   :  { %6680 = vmatpush3.msra.mxu0 %v1189_v3  ;;  %6681 = vmatprep.mubr.msk.f32.mxu0 %vm7232_vm1, %v7231_v1 }
 0x3a9   :  { %6714 = vmatprep.subr.bf16.mxu0 %v7231_v1 }
 0x3af   :  { %6682 = vmatmul.mubr.f32.vlgmr.msra.gmra.mrb[6].mxu0 %v7317_v12 }
 0x3b0   :  { %6716 = vmatprep.mubr.msk.bf16.mxu0 %vm7232_vm1, %v7231_v1 }
 0x456   :  { %v7455_v10 = vpop.f32.mrb[4].mxu0 }
 0x457   :  { %v6635_v11 = vpop.f32.mrb[5].mxu0 }
 0x458   :  { %v6386_v11 = vld [vmem:[%s7874_s0 + $0x4] sm:$0xf] }
 0x482   :  { %v1630_v15 = vpop.f32.mrb[6].mxu0 }
 0x483   :  { %1638 = vrot.lane.b32.xlu1 %v1630_v15, %s7236_s14  ;;  %v6683_v16 = vpop.f32.mrb[7].mxu0  ;;  %v1634_v17 = vsel %vm87_vm4, %v1630_v15, 0.0 }
 0x484   :  { %1635 = vadd.xlane.f32.xlu0 %v1634_v17 }
 0x4f5   :  { %v1639_v19 = vpop.permute.xlu1 %1638 }
 0x4f6   :  { %v1641_v20 = vsel %vm87_vm4, %v1639_v19, 0.0 }
 0x4f7   :  { %1642 = vadd.xlane.f32.xlu1 %v1641_v20 }
 0x508   :  { %2110 = vperm.xlu1 %7182, %v7490_v34  }
 0x50c   :  { %7183 = vset.pattern.permute.xlu1 %v7238_v35 }
 0x511   :  { %v1636_v22 = vpop.xlane.xlu0 %1635 }
 0x512   :  { %v1644_v23 = vmul.f32 0.0625, %v1636_v22 }
 0x514   :  { %v1646_v25 = vmul.f32 %v1644_v23, %v1644_v23 }
 0x584   :  { %v1643_v24 = vpop.xlane.xlu1 %1642 }
 0x585   :  { %v1645_v26 = vmul.f32 0.0625, %v1643_v24  ;;  %v3219_v24 = vpack.c.bf16 %v6386_v11, %v6386_v11 }
 0x587   :  { %v1647_v27 = vsub.f32 %v1645_v26, %v1646_v25  ;;  %v3221_v25 = vsel %vm38_vm0, %v3219_v24, 0 }
 0x588   :  { %v7497_v41 = vpop.permute.xlu1 %2110 }
 0x589   :  { %v1648_v28 = vsel %vm553_vm5, %v1644_v23, %v1647_v27 }
 0x58a   :  { %v1650_v29 = vand.u32 4294901760, %v1648_v28 }
 0x58c   :  { %6685 = vmatpush3.msra.mxu1 %v1650_v29  ;;  %v1727_v30 = vsub.f32 %v1648_v28, %v1650_v29 }
 0x58d   :  { %6687 = vmatmul.mubr.f32.vlgmr.msra.gmra.mrb[2].mxu1 %v7403_v58  ;;  %6689 = vmatprep.subr.mxu1 %v7231_v1 }
 0x58e   :  { %v1728_v31 = vand.u32 4294901760, %v1727_v30  ;;  %6691 = vmatprep.mubr.msk.f32.mxu1 %vm7232_vm1, %v7231_v1 }
 0x590   :  { %v1729_v32 = vsub.f32 %v1727_v30, %v1728_v31 }
 0x592   :  { %v1730_v33 = vand.u32 4294901760, %v1729_v32 }
 0x594   :  { %6690 = vmatpush3.msra.mxu1 %v1730_v33 }
 0x595   :  { %6692 = vmatmul.mubr.f32.vlgmr.msra.gmra.mrb[2].mxu1 %v7392_v47  ;;  %6694 = vmatprep.subr.mxu1 %v7231_v1 }
 0x596   :  { %6695 = vmatpush3.msra.mxu1 %v1727_v30  ;;  %6696 = vmatprep.mubr.msk.f32.mxu1 %vm7232_vm1, %v7231_v1 }
 0x597   :  { %6699 = vmatprep.subr.mxu1 %v7231_v1 }
 0x59d   :  { %6697 = vmatmul.mubr.f32.vlgmr.msra.gmra.mrb[2].mxu1 %v7395_v48 }
 0x59e   :  { %6700 = vmatpush3.msra.mxu1 %v1650_v29  ;;  %6701 = vmatprep.mubr.msk.f32.mxu1 %vm7232_vm1, %v7231_v1 }
 0x59f   :  { %6704 = vmatprep.subr.mxu1 %v7231_v1 }
 0x5a5   :  { %6702 = vmatmul.mubr.f32.vlgmr.msra.gmra.mrb[2].mxu1 %v7398_v51 }
 0x5a6   :  { %6705 = vmatpush3.msra.mxu1 %v1728_v31  ;;  %6706 = vmatprep.mubr.msk.f32.mxu1 %vm7232_vm1, %v7231_v1 }
 0x5a7   :  { %6709 = vmatprep.subr.mxu1 %v7231_v1 }
 0x5ad   :  { %6707 = vmatmul.mubr.f32.vlgmr.msra.gmra.mrb[2].mxu1 %v7392_v47 }
 0x5ae   :  { %6710 = vmatpush3.msra.mxu1 %v1650_v29  ;;  %6711 = vmatprep.mubr.msk.f32.mxu1 %vm7232_vm1, %v7231_v1 }
 0x5af   :  { %6732 = vmatprep.subr.mxu1 %v7231_v1 }
 0x5b5   :  { %6712 = vmatmul.mubr.f32.vlgmr.msra.gmra.mrb[2].mxu1 %v7392_v47 }
 0x5b6   :  { %6734 = vmatprep.mubr.msk.f32.mxu1 %vm7232_vm1, %v7231_v1 }
 0x688   :  { %v2091_v36 = vpop.f32.mrb[2].mxu1 }
 0x689   :  { %v2095_v37 = vadd.f32 1e-05, %v2091_v36  ;;  %2099 = vperm.xlu0 %7181, %v2091_v36   ;;  %v6713_v39 = vpop.f32.mrb[3].mxu1 }
 0x68b   :  { %7195 = vrsqrt.f32 %v2095_v37 }
 0x68d   :  { %7185 = vset.pattern.permute.xlu0 %v7238_v35 }
 0x68e   :  { %4193 = vrot.lane.b32.xlu0 %v6386_v11, %s7235_s29 }
 0x695   :  { %v7196_v40 = vpop.eup %7195 }
 0x696   :  { %2105 = vperm.xlu1 %7183, %v7196_v40  }
 0x69a   :  { %2115 = vperm.xlu1 %7183, %v7490_v34  }
 0x69e   :  { %7184 = vset.pattern.permute.xlu1 %v7237_v21 }
 0x708   :  { %v2100_v42 = vpop.permute.xlu0 %2099 }
 0x709   :  { %v2102_v43 = vsub.f32 %v7382_v38, %v2100_v42  ;;  %v6381_v38 = vld [vmem:[%s7876_s2 + $0x4] sm:$0xf] }
 0x715   :  { %v2106_v44 = vpop.permute.xlu1 %2105 }
 0x716   :  { %v2108_v45 = vmul.f32 %v2106_v44, %v2102_v43  ;;  %v4194_v44 = vpop.permute.xlu0 %4193 }
 0x718   :  { %v2113_v46 = vmul.f32 %v7497_v41, %v2108_v45  ;;  %v4196_v45 = vsel %vm553_vm5, 0.0, %v4194_v44 }
 0x719   :  { %v7501_v49 = vpop.permute.xlu1 %2115 }
 0x71a   :  { %v2118_v50 = vadd.f32 %v7501_v49, %v2113_v46  ;;  %v4197_v46 = vpack.c.bf16 %v4196_v45, %v4196_v45 }
 0x71c   :  { %v2119_v52 = vmax.f32 %v2118_v50, 0.0  ;;  %v6388_v50 = vld [vmem:[%s7875_s1 + $0x4] sm:$0xf] }
 0x71e   :  { %2121 = vrot.lane.b32.xlu1 %v2119_v52, %s7235_s29  ;;  %v2127_v53 = vpack.c.bf16 %v2119_v52, %v2119_v52 }
 0x720   :  { %v2135_v54 = vsel %vm2133_vm7, %v2127_v53, 0 }
 0x721   :  { %6715 = vmatpush3.bf16.msra.mxu0 %v2135_v54 }
 0x722   :  { %2223 = vrot.lane.b32.xlu1 %v2119_v52, %s7233_s28  ;;  %6720 = vmatprep.subr.bf16.mxu0 %v7231_v1  ;;  %v4247_v52 = vsel %vm38_vm0, %v4197_v46, 0 }
 0x724   :  { %6717 = vmatmul.mubr.msk.bf16.vlgmr.msra.gmra.mrb[8].mxu0 %vm89_vm3, %v6381_v38 }
 0x725   :  { %6722 = vmatprep.mubr.msk.bf16.mxu0 %vm7232_vm1, %v7231_v1 }
 0x790   :  { %v2122_v55 = vpop.permute.xlu1 %2121 }
 0x791   :  { %v2124_v56 = vsel %vm553_vm5, 0.0, %v2122_v55  ;;  %v4198_v55 = vld [vmem:[%s7875_s1] sm:$0xf] }
 0x792   :  { %v2125_v57 = vpack.c.bf16 %v2124_v56, %v2124_v56 }
 0x794   :  { %v2181_v59 = vsel %vm2133_vm7, %v2125_v57, 0  ;;  %v2224_v60 = vpop.permute.xlu1 %2223  ;;  %v6391_v57 = vld [vmem:[%s7875_s1 + $0x8] sm:$0xf] }
 0x795   :  { %v2226_v61 = vsel %vm1130_vm6, %v2224_v60, 0.0  ;;  %6721 = vmatpush3.bf16.msra.mxu0 %v2181_v59 }
 0x796   :  { %v2227_v63 = vpack.c.bf16 %v2226_v61, %v2226_v61  ;;  %6726 = vmatprep.subr.bf16.mxu0 %v7231_v1 }
 0x798   :  { %v2234_v0 = vsel %vm2133_vm7, %v2227_v63, 0  ;;  %6723 = vmatmul.mubr.msk.bf16.vlgmr.msra.gmra.mrb[8].mxu0 %vm89_vm3, %v2126_v62 }
 0x799   :  { %6727 = vmatpush3.bf16.msra.mxu0 %v2234_v0  ;;  %6728 = vmatprep.mubr.msk.bf16.mxu0 %vm7232_vm1, %v7231_v1 }
 0x79a   :  { %6762 = vmatprep.subr.mxu0 %v7231_v1 }
 0x7a4   :  { %6729 = vmatmul.mubr.msk.bf16.vlgmr.msra.gmra.mrb[8].mxu0 %vm89_vm3, %v6384_v2 }
 0x7a5   :  { %6764 = vmatprep.mubr.msk.f32.mxu0 %vm7232_vm1, %v7231_v1 }
 0x877   :  { %v7532_v3 = vpop.f32.mrb[8].mxu0 }
 0x878   :  { %v2277_v6 = vmul.f32 %v7532_v3, %v7532_v3  ;;  %v6730_v7 = vpop.f32.mrb[9].mxu0 }
 0x879   :  { %v2273_v8 = vpop.f32.mrb[10].mxu0 }
 0x87a   :  { %2279 = vrot.lane.b32.xlu1 %v2277_v6, %s7234_s3  ;;  %v6731_v9 = vpop.f32.mrb[11].mxu0 }
 0x8ec   :  { %v2280_v15 = vpop.permute.xlu1 %2279 }
 0x8ed   :  { %v2282_v16 = vsel %vm87_vm4, %v7532_v3, %v2280_v15 }
 0x8ee   :  { %v2284_v17 = vand.u32 4294901760, %v2282_v16 }
 0x8f0   :  { %v2361_v19 = vsub.f32 %v2282_v16, %v2284_v17  ;;  %6733 = vmatpush3.msra.mxu1 %v2284_v17 }
 0x8f1   :  { %6735 = vmatmul.mubr.f32.vlgmr.msra.gmra.mrb[8].mxu1 %v7329_v18  ;;  %6737 = vmatprep.subr.mxu1 %v7231_v1 }
 0x8f2   :  { %v2362_v20 = vand.u32 4294901760, %v2361_v19  ;;  %6739 = vmatprep.mubr.msk.f32.mxu1 %vm7232_vm1, %v7231_v1 }
 0x8f4   :  { %v2363_v22 = vsub.f32 %v2361_v19, %v2362_v20 }
 0x8f6   :  { %v2364_v23 = vand.u32 4294901760, %v2363_v22 }
 0x8f8   :  { %6738 = vmatpush3.msra.mxu1 %v2364_v23 }
 0x8f9   :  { %6740 = vmatmul.mubr.f32.vlgmr.msra.gmra.mrb[8].mxu1 %v7317_v12  ;;  %6742 = vmatprep.subr.mxu1 %v7231_v1 }
 0x8fa   :  { %6743 = vmatpush3.msra.mxu1 %v2361_v19  ;;  %6744 = vmatprep.mubr.msk.f32.mxu1 %vm7232_vm1, %v7231_v1 }
 0x8fb   :  { %6747 = vmatprep.subr.mxu1 %v7231_v1 }
 0x901   :  { %6745 = vmatmul.mubr.f32.vlgmr.msra.gmra.mrb[8].mxu1 %v7320_v13 }
 0x902   :  { %6748 = vmatpush3.msra.mxu1 %v2284_v17  ;;  %6749 = vmatprep.mubr.msk.f32.mxu1 %vm7232_vm1, %v7231_v1 }
 0x903   :  { %6752 = vmatprep.subr.mxu1 %v7231_v1 }
 0x909   :  { %6750 = vmatmul.mubr.f32.vlgmr.msra.gmra.mrb[8].mxu1 %v7323_v14 }
 0x90a   :  { %6753 = vmatpush3.msra.mxu1 %v2362_v20  ;;  %6754 = vmatprep.mubr.msk.f32.mxu1 %vm7232_vm1, %v7231_v1 }
 0x90b   :  { %6757 = vmatprep.subr.mxu1 %v7231_v1 }
 0x911   :  { %6755 = vmatmul.mubr.f32.vlgmr.msra.gmra.mrb[8].mxu1 %v7317_v12 }
 0x912   :  { %6758 = vmatpush3.msra.mxu1 %v2284_v17  ;;  %6759 = vmatprep.mubr.msk.f32.mxu1 %vm7232_vm1, %v7231_v1 }
 0x913   :  { %6792 = vmatprep.subr.bf16.mxu1 %v7231_v1 }
 0x919   :  { %6760 = vmatmul.mubr.f32.vlgmr.msra.gmra.mrb[8].mxu1 %v7317_v12 }
 0x91a   :  { %6793 = vmatpush3.bf16.msra.mxu1 %v3221_v25  ;;  %6794 = vmatprep.mubr.msk.bf16.mxu1 %vm7232_vm1, %v7231_v1 }
 0x91b   :  { %6798 = vmatprep.subr.mxu1 %v7231_v1 }
 0x91d   :  { %6795 = vmatmul.mubr.msk.bf16.vlgmr.msra.gmra.mrb[12].mxu1 %vm34_vm2, %v7299_v4 }
 0x91e   :  { %6800 = vmatprep.mubr.msk.f32.mxu1 %vm7232_vm1, %v7231_v1 }
 0x9ec   :  { %v2725_v26 = vpop.f32.mrb[8].mxu1 }
 0x9ed   :  { %2733 = vrot.lane.b32.xlu0 %v2725_v26, %s7236_s14  ;;  %v6761_v27 = vpop.f32.mrb[9].mxu1  ;;  %v2729_v4 = vsel %vm87_vm4, %v2725_v26, 0.0 }
 0x9f0   :  { %v7574_v28 = vpop.f32.mrb[12].mxu1 }
 0x9f1   :  { %v3263_v29 = vmul.f32 %v7574_v28, %v7574_v28  ;;  %v6796_v30 = vpop.f32.mrb[13].mxu1 }
 0x9f2   :  { %v3260_v31 = vpop.f32.mrb[14].mxu1 }
 0x9f3   :  { %3265 = vrot.lane.b32.xlu1 %v3263_v29, %s7234_s3  ;;  %v6797_v32 = vpop.f32.mrb[15].mxu1 }
 0x9f7   :  { %4289 = vrot.lane.b32.xlu1 %v6386_v11, %s7233_s28 }
 0xa0c   :  { %2730 = vadd.xlane.f32.xlu0 %v2729_v4 }
 0xa5f   :  { %v2734_v6 = vpop.permute.xlu0 %2733 }
 0xa60   :  { %v2736_v7 = vsel %vm87_vm4, %v2734_v6, 0.0 }
 0xa65   :  { %v3266_v33 = vpop.permute.xlu1 %3265 }
 0xa66   :  { %v3268_v36 = vsel %vm87_vm4, %v7574_v28, %v3266_v33 }
 0xa67   :  { %v3270_v37 = vand.u32 4294901760, %v3268_v36 }
 0xa69   :  { %v3347_v39 = vsub.f32 %v3268_v36, %v3270_v37  ;;  %6799 = vmatpush3.msra.mxu1 %v3270_v37  ;;  %v4290_v53 = vpop.permute.xlu1 %4289 }
 0xa6a   :  { %6801 = vmatmul.mubr.f32.vlgmr.msra.gmra.mrb[10].mxu1 %v7329_v18  ;;  %6803 = vmatprep.subr.mxu1 %v7231_v1  ;;  %v4292_v54 = vsel %vm1130_vm6, %v4290_v53, 0.0 }
 0xa6b   :  { %v3348_v40 = vand.u32 4294901760, %v3347_v39  ;;  %6805 = vmatprep.mubr.msk.f32.mxu1 %vm7232_vm1, %v7231_v1  ;;  %v4293_v38 = vpack.c.bf16 %v4292_v54, %v4292_v54 }
 0xa6d   :  { %v3349_v42 = vsub.f32 %v3347_v39, %v3348_v40  ;;  %v4299_v56 = vsel %vm38_vm0, %v4293_v38, 0 }
 0xa6f   :  { %v3350_v43 = vand.u32 4294901760, %v3349_v42 }
 0xa71   :  { %6804 = vmatpush3.msra.mxu1 %v3350_v43 }
 0xa72   :  { %6806 = vmatmul.mubr.f32.vlgmr.msra.gmra.mrb[10].mxu1 %v7317_v12  ;;  %6808 = vmatprep.subr.mxu1 %v7231_v1 }
 0xa73   :  { %6809 = vmatpush3.msra.mxu1 %v3347_v39  ;;  %6810 = vmatprep.mubr.msk.f32.mxu1 %vm7232_vm1, %v7231_v1 }
 0xa74   :  { %6813 = vmatprep.subr.mxu1 %v7231_v1 }
 0xa7a   :  { %6811 = vmatmul.mubr.f32.vlgmr.msra.gmra.mrb[10].mxu1 %v7320_v13 }
 0xa7b   :  { %6814 = vmatpush3.msra.mxu1 %v3270_v37  ;;  %6815 = vmatprep.mubr.msk.f32.mxu1 %vm7232_vm1, %v7231_v1 }
 0xa7c   :  { %6818 = vmatprep.subr.mxu1 %v7231_v1 }
 0xa82   :  { %6816 = vmatmul.mubr.f32.vlgmr.msra.gmra.mrb[10].mxu1 %v7323_v14 }
 0xa83   :  { %6819 = vmatpush3.msra.mxu1 %v3348_v40  ;;  %6820 = vmatprep.mubr.msk.f32.mxu1 %vm7232_vm1, %v7231_v1 }
 0xa84   :  { %6823 = vmatprep.subr.mxu1 %v7231_v1 }
 0xa8a   :  { %6821 = vmatmul.mubr.f32.vlgmr.msra.gmra.mrb[10].mxu1 %v7317_v12 }
 0xa8b   :  { %6824 = vmatpush3.msra.mxu1 %v3270_v37  ;;  %6825 = vmatprep.mubr.msk.f32.mxu1 %vm7232_vm1, %v7231_v1 }
 0xa8c   :  { %6858 = vmatprep.subr.bf16.mxu1 %v7231_v1 }
 0xa92   :  { %6826 = vmatmul.mubr.f32.vlgmr.msra.gmra.mrb[10].mxu1 %v7317_v12 }
 0xa93   :  { %6859 = vmatpush3.bf16.msra.mxu1 %v3221_v25  ;;  %6860 = vmatprep.mubr.msk.bf16.mxu1 %vm7232_vm1, %v7231_v1 }
 0xa94   :  { %6864 = vmatprep.subr.bf16.mxu1 %v7231_v1 }
 0xa96   :  { %6861 = vmatmul.mubr.msk.bf16.vlgmr.msra.gmra.mrb[16].mxu1 %vm34_vm2, %v6388_v50 }
 0xa97   :  { %6865 = vmatpush3.bf16.msra.mxu1 %v4247_v52  ;;  %6866 = vmatprep.mubr.msk.bf16.mxu1 %vm7232_vm1, %v7231_v1 }
 0xa98   :  { %6870 = vmatprep.subr.bf16.mxu1 %v7231_v1 }
 0xa99   :  { %v2731_v15 = vpop.xlane.xlu0 %2730 }
 0xa9a   :  { %v2739_v16 = vmul.f32 0.0625, %v2731_v15 }
 0xa9c   :  { %v2741_v19 = vmul.f32 %v2739_v16, %v2739_v16 }
 0xaa2   :  { %6867 = vmatmul.mubr.msk.bf16.vlgmr.msra.gmra.mrb[16].mxu1 %vm34_vm2, %v4198_v55 }
 0xaa3   :  { %6871 = vmatpush3.bf16.msra.mxu1 %v4299_v56  ;;  %6872 = vmatprep.mubr.msk.bf16.mxu1 %vm7232_vm1, %v7231_v1 }
 0xaa4   :  { %6906 = vmatprep.subr.mxu1 %v7231_v1 }
 0xaae   :  { %6873 = vmatmul.mubr.msk.bf16.vlgmr.msra.gmra.mrb[16].mxu1 %vm34_vm2, %v6391_v57 }
 0xaaf   :  { %6908 = vmatprep.mubr.msk.f32.mxu1 %vm7232_vm1, %v7231_v1 }
 0xb65   :  { %v3711_v59 = vpop.f32.mrb[10].mxu1 }
 0xb66   :  { %3719 = vrot.lane.b32.xlu1 %v3711_v59, %s7236_s14  ;;  %v6827_v60 = vpop.f32.mrb[11].mxu1  ;;  %v3715_v61 = vsel %vm87_vm4, %v3711_v59, 0.0 }
 0xb67   :  { %3716 = vadd.xlane.f32.xlu0 %v3715_v61 }
 0xb81   :  { %v7634_v62 = vpop.f32.mrb[16].mxu1 }
 0xb82   :  { %v6874_v63 = vpop.f32.mrb[17].mxu1  ;;  %v4342_v8 = vmul.f32 %v7634_v62, %v7634_v62 }
 0xb83   :  { %v4338_v0 = vpop.f32.mrb[18].mxu1 }
 0xb84   :  { %v6875_v2 = vpop.f32.mrb[19].mxu1 }
 0xb8a   :  { %2737 = vadd.xlane.f32.xlu1 %v2736_v7 }
 0xb9b   :  { %4344 = vrot.lane.b32.xlu1 %v4342_v8, %s7234_s3 }
 0xbd8   :  { %v3720_v9 = vpop.permute.xlu1 %3719 }
 0xbd9   :  { %v3722_v11 = vsel %vm87_vm4, %v3720_v9, 0.0 }
 0xbda   :  { %3723 = vadd.xlane.f32.xlu0 %v3722_v11 }
 0xbf4   :  { %v3717_v30 = vpop.xlane.xlu0 %3716 }
 0xbf5   :  { %v3725_v31 = vmul.f32 0.0625, %v3717_v30 }
 0xbf7   :  { %v3727_v4 = vmul.f32 %v3725_v31, %v3725_v31 }
 0xc17   :  { %v2738_v17 = vpop.xlane.xlu1 %2737 }
 0xc18   :  { %v2740_v20 = vmul.f32 0.0625, %v2738_v17 }
 0xc1a   :  { %v2742_v22 = vsub.f32 %v2740_v20, %v2741_v19 }
 0xc1b   :  { %v4345_v45 = vpop.permute.xlu1 %4344 }
 0xc1c   :  { %v2743_v23 = vsel %vm553_vm5, %v2739_v16, %v2742_v22  ;;  %v4347_v46 = vsel %vm87_vm4, %v7634_v62, %v4345_v45  ;;  %v5278_v45 = vld [vmem:[%s7876_s2] sm:$0xf] }
 0xc1d   :  { %v2745_v24 = vand.u32 4294901760, %v2743_v23  ;;  %v4349_v50 = vand.u32 4294901760, %v4347_v46 }
 0xc1f   :  { %6763 = vmatpush3.msra.mxu0 %v2745_v24  ;;  %v2822_v25 = vsub.f32 %v2743_v23, %v2745_v24  ;;  %v4426_v52 = vsub.f32 %v4347_v46, %v4349_v50 }
 0xc20   :  { %6765 = vmatmul.mubr.f32.vlgmr.msra.gmra.mrb[12].mxu0 %v7403_v58  ;;  %6767 = vmatprep.subr.mxu0 %v7231_v1 }
 0xc21   :  { %v2823_v26 = vand.u32 4294901760, %v2822_v25  ;;  %6769 = vmatprep.mubr.msk.f32.mxu0 %vm7232_vm1, %v7231_v1  ;;  %v4427_v53 = vand.u32 4294901760, %v4426_v52 }
 0xc23   :  { %v2824_v27 = vsub.f32 %v2822_v25, %v2823_v26  ;;  %v4428_v54 = vsub.f32 %v4426_v52, %v4427_v53 }
 0xc25   :  { %v2825_v29 = vand.u32 4294901760, %v2824_v27  ;;  %v4429_v38 = vand.u32 4294901760, %v4428_v54 }
 0xc27   :  { %6768 = vmatpush3.msra.mxu0 %v2825_v29 }
 0xc28   :  { %6770 = vmatmul.mubr.f32.vlgmr.msra.gmra.mrb[12].mxu0 %v7392_v47  ;;  %6772 = vmatprep.subr.mxu0 %v7231_v1 }
 0xc29   :  { %6773 = vmatpush3.msra.mxu0 %v2822_v25  ;;  %6774 = vmatprep.mubr.msk.f32.mxu0 %vm7232_vm1, %v7231_v1 }
 0xc2a   :  { %6777 = vmatprep.subr.mxu0 %v7231_v1 }
 0xc30   :  { %6775 = vmatmul.mubr.f32.vlgmr.msra.gmra.mrb[12].mxu0 %v7395_v48 }
 0xc31   :  { %6778 = vmatpush3.msra.mxu0 %v2745_v24  ;;  %6779 = vmatprep.mubr.msk.f32.mxu0 %vm7232_vm1, %v7231_v1 }
 0xc32   :  { %6782 = vmatprep.subr.mxu0 %v7231_v1 }
 0xc38   :  { %6780 = vmatmul.mubr.f32.vlgmr.msra.gmra.mrb[12].mxu0 %v7398_v51 }
 0xc39   :  { %6783 = vmatpush3.msra.mxu0 %v2823_v26  ;;  %6784 = vmatprep.mubr.msk.f32.mxu0 %vm7232_vm1, %v7231_v1 }
 0xc3a   :  { %6787 = vmatprep.subr.mxu0 %v7231_v1 }
 0xc40   :  { %6785 = vmatmul.mubr.f32.vlgmr.msra.gmra.mrb[12].mxu0 %v7392_v47 }
 0xc41   :  { %6788 = vmatpush3.msra.mxu0 %v2745_v24  ;;  %6789 = vmatprep.mubr.msk.f32.mxu0 %vm7232_vm1, %v7231_v1 }
 0xc42   :  { %6828 = vmatprep.subr.mxu0 %v7231_v1 }
 0xc48   :  { %6790 = vmatmul.mubr.f32.vlgmr.msra.gmra.mrb[12].mxu0 %v7392_v47 }
 0xc49   :  { %6830 = vmatprep.mubr.msk.f32.mxu0 %vm7232_vm1, %v7231_v1 }
 0xc67   :  { %v3724_v32 = vpop.xlane.xlu0 %3723 }
 0xc68   :  { %v3726_v33 = vmul.f32 0.0625, %v3724_v32 }
 0xc6a   :  { %v3728_v36 = vsub.f32 %v3726_v33, %v3727_v4 }
 0xc6c   :  { %v3729_v37 = vsel %vm553_vm5, %v3725_v31, %v3728_v36 }
 0xc6d   :  { %v3731_v39 = vand.u32 4294901760, %v3729_v37 }
 0xc6f   :  { %6829 = vmatpush3.msra.mxu0 %v3731_v39  ;;  %v3808_v40 = vsub.f32 %v3729_v37, %v3731_v39 }
 0xc70   :  { %6831 = vmatmul.mubr.f32.vlgmr.msra.gmra.mrb[14].mxu0 %v7403_v58  ;;  %6833 = vmatprep.subr.mxu0 %v7231_v1 }
 0xc71   :  { %v3809_v42 = vand.u32 4294901760, %v3808_v40  ;;  %6835 = vmatprep.mubr.msk.f32.mxu0 %vm7232_vm1, %v7231_v1 }
 0xc73   :  { %v3810_v43 = vsub.f32 %v3808_v40, %v3809_v42 }
 0xc75   :  { %v3811_v44 = vand.u32 4294901760, %v3810_v43 }
 0xc77   :  { %6834 = vmatpush3.msra.mxu0 %v3811_v44 }
 0xc78   :  { %6836 = vmatmul.mubr.f32.vlgmr.msra.gmra.mrb[14].mxu0 %v7392_v47  ;;  %6838 = vmatprep.subr.mxu0 %v7231_v1 }
 0xc79   :  { %6839 = vmatpush3.msra.mxu0 %v3808_v40  ;;  %6840 = vmatprep.mubr.msk.f32.mxu0 %vm7232_vm1, %v7231_v1  ;;  %v6393_v40 = vld [vmem:[%s7876_s2 + $0x4] sm:$0xf] }
 0xc7a   :  { %6843 = vmatprep.subr.mxu0 %v7231_v1 }
 0xc80   :  { %6841 = vmatmul.mubr.f32.vlgmr.msra.gmra.mrb[14].mxu0 %v7395_v48 }
 0xc81   :  { %6844 = vmatpush3.msra.mxu0 %v3731_v39  ;;  %6845 = vmatprep.mubr.msk.f32.mxu0 %vm7232_vm1, %v7231_v1 }
 0xc82   :  { %6848 = vmatprep.subr.mxu0 %v7231_v1 }
 0xc88   :  { %6846 = vmatmul.mubr.f32.vlgmr.msra.gmra.mrb[14].mxu0 %v7398_v51 }
 0xc89   :  { %6849 = vmatpush3.msra.mxu0 %v3809_v42  ;;  %6850 = vmatprep.mubr.msk.f32.mxu0 %vm7232_vm1, %v7231_v1 }
 0xc8a   :  { %6853 = vmatprep.subr.mxu0 %v7231_v1 }
 0xc90   :  { %6851 = vmatmul.mubr.f32.vlgmr.msra.gmra.mrb[14].mxu0 %v7392_v47 }
 0xc91   :  { %6854 = vmatpush3.msra.mxu0 %v3731_v39  ;;  %6855 = vmatprep.mubr.msk.f32.mxu0 %vm7232_vm1, %v7231_v1 }
 0xc92   :  { %6876 = vmatprep.subr.mxu0 %v7231_v1 }
 0xc98   :  { %6856 = vmatmul.mubr.f32.vlgmr.msra.gmra.mrb[14].mxu0 %v7392_v47 }
 0xc99   :  { %6877 = vmatpush3.msra.mxu0 %v4349_v50  ;;  %6878 = vmatprep.mubr.msk.f32.mxu0 %vm7232_vm1, %v7231_v1 }
 0xc9a   :  { %6881 = vmatprep.subr.mxu0 %v7231_v1 }
 0xc9c   :  { %6879 = vmatmul.mubr.f32.vlgmr.msra.gmra.mrb[16].mxu0 %v7329_v18 }
 0xc9d   :  { %6882 = vmatpush3.msra.mxu0 %v4429_v38  ;;  %6883 = vmatprep.mubr.msk.f32.mxu0 %vm7232_vm1, %v7231_v1 }
 0xc9e   :  { %6886 = vmatprep.subr.mxu0 %v7231_v1 }
 0xca4   :  { %6884 = vmatmul.mubr.f32.vlgmr.msra.gmra.mrb[16].mxu0 %v7317_v12 }
 0xca5   :  { %6887 = vmatpush3.msra.mxu0 %v4426_v52  ;;  %6888 = vmatprep.mubr.msk.f32.mxu0 %vm7232_vm1, %v7231_v1  ;;  %v6396_v52 = vld [vmem:[%s7876_s2 + $0x8] sm:$0xf]  ;;  %s7243_s2 = smov [#allocation2]  }
 0xca6   :  { %6891 = vmatprep.subr.mxu0 %v7231_v1 }
 0xcac   :  { %6889 = vmatmul.mubr.f32.vlgmr.msra.gmra.mrb[16].mxu0 %v7320_v13 }
 0xcad   :  { %6892 = vmatpush3.msra.mxu0 %v4349_v50  ;;  %6893 = vmatprep.mubr.msk.f32.mxu0 %vm7232_vm1, %v7231_v1 }
 0xcae   :  { %6896 = vmatprep.subr.mxu0 %v7231_v1 }
 0xcb4   :  { %6894 = vmatmul.mubr.f32.vlgmr.msra.gmra.mrb[16].mxu0 %v7323_v14 }
 0xcb5   :  { %6897 = vmatpush3.msra.mxu0 %v4427_v53  ;;  %6898 = vmatprep.mubr.msk.f32.mxu0 %vm7232_vm1, %v7231_v1 }
 0xcb6   :  { %6901 = vmatprep.subr.mxu0 %v7231_v1 }
 0xcbc   :  { %6899 = vmatmul.mubr.f32.vlgmr.msra.gmra.mrb[16].mxu0 %v7317_v12 }
 0xcbd   :  { %6902 = vmatpush3.msra.mxu0 %v4349_v50  ;;  %6903 = vmatprep.mubr.msk.f32.mxu0 %vm7232_vm1, %v7231_v1 }
 0xcbe   :  { %6936 = vmatprep.subr.bf16.mxu0 %v7231_v1 }
 0xcc4   :  { %6904 = vmatmul.mubr.f32.vlgmr.msra.gmra.mrb[16].mxu0 %v7317_v12 }
 0xcc5   :  { %6938 = vmatprep.mubr.msk.bf16.mxu0 %vm7232_vm1, %v7231_v1 }
 0xd1b   :  { %v7717_v55 = vpop.f32.mrb[12].mxu0 }
 0xd1c   :  { %v6791_v56 = vpop.f32.mrb[13].mxu0 }
 0xd6b   :  { %v7719_v57 = vpop.f32.mrb[14].mxu0 }
 0xd6c   :  { %v6857_v59 = vpop.f32.mrb[15].mxu0 }
 0xd97   :  { %v4790_v60 = vpop.f32.mrb[16].mxu0 }
 0xd98   :  { %4798 = vrot.lane.b32.xlu0 %v4790_v60, %s7236_s14  ;;  %v6905_v61 = vpop.f32.mrb[17].mxu0  ;;  %v4794_v63 = vsel %vm87_vm4, %v4790_v60, 0.0 }
 0xd99   :  { %4795 = vadd.xlane.f32.xlu1 %v4794_v63 }
 0xe0a   :  { %v4799_v0 = vpop.permute.xlu0 %4798 }
 0xe0b   :  { %v4801_v2 = vsel %vm87_vm4, %v4799_v0, 0.0 }
 0xe0c   :  { %4802 = vadd.xlane.f32.xlu0 %v4801_v2 }
 0xe26   :  { %v4796_v6 = vpop.xlane.xlu1 %4795 }
 0xe27   :  { %v4804_v7 = vmul.f32 0.0625, %v4796_v6 }
 0xe29   :  { %v4806_v9 = vmul.f32 %v4804_v7, %v4804_v7 }
 0xe99   :  { %v4803_v8 = vpop.xlane.xlu0 %4802 }
 0xe9a   :  { %v4805_v11 = vmul.f32 0.0625, %v4803_v8  ;;  %v7239_v8 = vmov 4  }
 0xe9c   :  { %v4807_v15 = vsub.f32 %v4805_v11, %v4806_v9  ;;  %v7240_v9 = vmov 5   ;;  %v7241_v11 = vmov 2  }
 0xe9e   :  { %v4808_v16 = vsel %vm553_vm5, %v4804_v7, %v4807_v15 }
 0xe9f   :  { %v4810_v17 = vand.u32 4294901760, %v4808_v16 }
 0xea1   :  { %6907 = vmatpush3.msra.mxu1 %v4810_v17  ;;  %v4887_v19 = vsub.f32 %v4808_v16, %v4810_v17 }
 0xea2   :  { %6909 = vmatmul.mubr.f32.vlgmr.msra.gmra.mrb[20].mxu1 %v7403_v58  ;;  %6911 = vmatprep.subr.mxu1 %v7231_v1 }
 0xea3   :  { %v4888_v20 = vand.u32 4294901760, %v4887_v19  ;;  %6913 = vmatprep.mubr.msk.f32.mxu1 %vm7232_vm1, %v7231_v1 }
 0xea5   :  { %v4889_v22 = vsub.f32 %v4887_v19, %v4888_v20 }
 0xea7   :  { %v4890_v23 = vand.u32 4294901760, %v4889_v22 }
 0xea9   :  { %6912 = vmatpush3.msra.mxu1 %v4890_v23 }
 0xeaa   :  { %6914 = vmatmul.mubr.f32.vlgmr.msra.gmra.mrb[20].mxu1 %v7392_v47  ;;  %6916 = vmatprep.subr.mxu1 %v7231_v1 }
 0xeab   :  { %6917 = vmatpush3.msra.mxu1 %v4887_v19  ;;  %6918 = vmatprep.mubr.msk.f32.mxu1 %vm7232_vm1, %v7231_v1  ;;  %v1004_v19 = vadd.f32 1e-05, %v7455_v10 }
 0xeac   :  { %6921 = vmatprep.subr.mxu1 %v7231_v1 }
 0xeb2   :  { %6919 = vmatmul.mubr.f32.vlgmr.msra.gmra.mrb[20].mxu1 %v7395_v48 }
 0xeb3   :  { %6922 = vmatpush3.msra.mxu1 %v4810_v17  ;;  %6923 = vmatprep.mubr.msk.f32.mxu1 %vm7232_vm1, %v7231_v1 }
 0xeb4   :  { %6926 = vmatprep.subr.mxu1 %v7231_v1 }
 0xeba   :  { %6924 = vmatmul.mubr.f32.vlgmr.msra.gmra.mrb[20].mxu1 %v7398_v51 }
 0xebb   :  { %6927 = vmatpush3.msra.mxu1 %v4888_v20  ;;  %6928 = vmatprep.mubr.msk.f32.mxu1 %vm7232_vm1, %v7231_v1  ;;  %v3190_v20 = vadd.f32 1e-05, %v7717_v55 }
 0xebc   :  { %6931 = vmatprep.subr.mxu1 %v7231_v1 }
 0xec2   :  { %6929 = vmatmul.mubr.f32.vlgmr.msra.gmra.mrb[20].mxu1 %v7392_v47 }
 0xec3   :  { %6932 = vmatpush3.msra.mxu1 %v4810_v17  ;;  %6933 = vmatprep.mubr.msk.f32.mxu1 %vm7232_vm1, %v7231_v1 }
 0xec4   :  { %6954 = vmatprep.subr.mxu1 %v7231_v1 }
 0xeca   :  { %6934 = vmatmul.mubr.f32.vlgmr.msra.gmra.mrb[20].mxu1 %v7392_v47 }
 0xecb   :  { %6956 = vmatprep.mubr.msk.f32.mxu1 %vm7232_vm1, %v7231_v1 }
 0xf9d   :  { %v5251_v24 = vpop.f32.mrb[20].mxu1 }
 0xf9e   :  { %v5255_v25 = vadd.f32 1e-05, %v5251_v24  ;;  %5259 = vperm.xlu1 %7184, %v5251_v24   ;;  %v6935_v26 = vpop.f32.mrb[21].mxu1  ;;  %v7242_v24 = vmov 3  }
 0xfa0   :  { %7197 = vrsqrt.f32 %v5255_v25 }
 0xfaa   :  { %v7198_v27 = vpop.eup %7197 }
 0xfab   :  { %5265 = vperm.xlu0 %7185, %v7198_v27  }
0x101d   :  { %v5260_v29 = vpop.permute.xlu1 %5259 }
0x101e   :  { %v5262_v30 = vsub.f32 %v7634_v62, %v5260_v29 }
0x102a   :  { %v5266_v31 = vpop.permute.xlu0 %5265 }
0x102b   :  { %v5268_v32 = vmul.f32 %v5266_v31, %v5262_v30 }
0x102d   :  { %v5269_v4 = vmul.f32 %v5268_v32, %v7497_v41 }
0x102f   :  { %v5270_v33 = vadd.f32 %v5269_v4, %v7501_v49 }
0x1031   :  { %v5271_v36 = vmax.f32 %v5270_v33, 0.0 }
0x1033   :  { %5273 = vrot.lane.b32.xlu1 %v5271_v36, %s7235_s29  ;;  %v5279_v37 = vpack.c.bf16 %v5271_v36, %v5271_v36 }
0x1035   :  { %v5285_v39 = vsel %vm2133_vm7, %v5279_v37, 0 }
0x1036   :  { %6937 = vmatpush3.bf16.msra.mxu0 %v5285_v39 }
0x1037   :  { %5373 = vrot.lane.b32.xlu1 %v5271_v36, %s7233_s28  ;;  %6942 = vmatprep.subr.bf16.mxu0 %v7231_v1 }
0x1039   :  { %6939 = vmatmul.mubr.msk.bf16.vlgmr.msra.gmra.mrb[20].mxu0 %vm89_vm3, %v6393_v40 }
0x103a   :  { %6944 = vmatprep.mubr.msk.bf16.mxu0 %vm7232_vm1, %v7231_v1 }
0x10a5   :  { %v5274_v41 = vpop.permute.xlu1 %5273 }
0x10a6   :  { %v5276_v49 = vsel %vm553_vm5, 0.0, %v5274_v41 }
0x10a7   :  { %v5277_v62 = vpack.c.bf16 %v5276_v49, %v5276_v49 }
0x10a9   :  { %v5331_v42 = vsel %vm2133_vm7, %v5277_v62, 0  ;;  %v5374_v43 = vpop.permute.xlu1 %5373 }
0x10aa   :  { %v5376_v44 = vsel %vm1130_vm6, %v5374_v43, 0.0  ;;  %6943 = vmatpush3.bf16.msra.mxu0 %v5331_v42 }
0x10ab   :  { %v5377_v46 = vpack.c.bf16 %v5376_v44, %v5376_v44  ;;  %6948 = vmatprep.subr.bf16.mxu0 %v7231_v1 }
0x10ad   :  { %v5383_v50 = vsel %vm2133_vm7, %v5377_v46, 0  ;;  %6945 = vmatmul.mubr.msk.bf16.vlgmr.msra.gmra.mrb[20].mxu0 %vm89_vm3, %v5278_v45 }
0x10ae   :  { %6949 = vmatpush3.bf16.msra.mxu0 %v5383_v50  ;;  %6950 = vmatprep.mubr.msk.bf16.mxu0 %vm7232_vm1, %v7231_v1 }
0x10af   :  { %6984 = vmatprep.subr.mxu0 %v7231_v1 }
0x10b9   :  { %6951 = vmatmul.mubr.msk.bf16.vlgmr.msra.gmra.mrb[20].mxu0 %vm89_vm3, %v6396_v52 }
0x10ba   :  { %6986 = vmatprep.mubr.msk.f32.mxu0 %vm7232_vm1, %v7231_v1 }
0x118c   :  { %v7780_v53 = vpop.f32.mrb[20].mxu0 }
0x118d   :  { %v5426_v54 = vmul.f32 %v7780_v53, %v7780_v53  ;;  %v6952_v38 = vpop.f32.mrb[21].mxu0 }
0x118e   :  { %v5422_v56 = vpop.f32.mrb[22].mxu0 }
0x118f   :  { %5428 = vrot.lane.b32.xlu1 %v5426_v54, %s7234_s3  ;;  %v6953_v59 = vpop.f32.mrb[23].mxu0  ;;  %s6364_s3 = sshll.u32 %s7243_s2, 4  ;;  %s6365_s3 = int_to_ptr.vmem [resolvable:$true] %s6364_s3 }
0x1190   :  { %s7207_s11 = scalar_lea.vmem %s6365_s3, 256  ;;  %p7212_p1 = scmp.lt.s32.totalorder %s6365_s3, %s6365_s3 }
0x1191   :  { %p7208_p0 = scmp.ne.s32.totalorder %s6365_s3, %s7207_s11  ;;  %p7213_p2 = scmp.lt.s32.totalorder %s7207_s11, %s7207_s11 }
0x1193   :  { %p7214_p3 = por %p7213_p2, %p7212_p1 }
0x1195   :  { %p7215_p4 = pnand %p7214_p3, %p7208_p0 }
0x1201   :  { %v5429_v60 = vpop.permute.xlu1 %5428 }
0x1202   :  { %v5431_v61 = vsel %vm87_vm4, %v7780_v53, %v5429_v60 }
0x1203   :  { %v5433_v63 = vand.u32 4294901760, %v5431_v61 }
0x1205   :  { %v5510_v0 = vsub.f32 %v5431_v61, %v5433_v63  ;;  %6955 = vmatpush3.msra.mxu1 %v5433_v63 }
0x1206   :  { %6957 = vmatmul.mubr.f32.vlgmr.msra.gmra.mrb[22].mxu1 %v7329_v18  ;;  %6959 = vmatprep.subr.mxu1 %v7231_v1 }
0x1207   :  { %v5511_v2 = vand.u32 4294901760, %v5510_v0  ;;  %6961 = vmatprep.mubr.msk.f32.mxu1 %vm7232_vm1, %v7231_v1 }
0x1209   :  { %v5512_v6 = vsub.f32 %v5510_v0, %v5511_v2 }
0x120b   :  { %v5513_v7 = vand.u32 4294901760, %v5512_v6 }
0x120d   :  { %6960 = vmatpush3.msra.mxu1 %v5513_v7 }
0x120e   :  { %6962 = vmatmul.mubr.f32.vlgmr.msra.gmra.mrb[22].mxu1 %v7317_v12  ;;  %6964 = vmatprep.subr.mxu1 %v7231_v1 }
0x120f   :  { %6965 = vmatpush3.msra.mxu1 %v5510_v0  ;;  %6966 = vmatprep.mubr.msk.f32.mxu1 %vm7232_vm1, %v7231_v1 }
0x1210   :  { %6969 = vmatprep.subr.mxu1 %v7231_v1 }
0x1216   :  { %6967 = vmatmul.mubr.f32.vlgmr.msra.gmra.mrb[22].mxu1 %v7320_v13 }
0x1217   :  { %6970 = vmatpush3.msra.mxu1 %v5433_v63  ;;  %6971 = vmatprep.mubr.msk.f32.mxu1 %vm7232_vm1, %v7231_v1 }
0x1218   :  { %6974 = vmatprep.subr.mxu1 %v7231_v1 }
0x121e   :  { %6972 = vmatmul.mubr.f32.vlgmr.msra.gmra.mrb[22].mxu1 %v7323_v14 }
0x121f   :  { %6975 = vmatpush3.msra.mxu1 %v5511_v2  ;;  %6976 = vmatprep.mubr.msk.f32.mxu1 %vm7232_vm1, %v7231_v1 }
0x1220   :  { %6979 = vmatprep.subr.mxu1 %v7231_v1 }
0x1226   :  { %6977 = vmatmul.mubr.f32.vlgmr.msra.gmra.mrb[22].mxu1 %v7317_v12 }
0x1227   :  { %6980 = vmatpush3.msra.mxu1 %v5433_v63  ;;  %6981 = vmatprep.mubr.msk.f32.mxu1 %vm7232_vm1, %v7231_v1 }
0x122e   :  { %6982 = vmatmul.mubr.f32.vlgmr.msra.gmra.mrb[22].mxu1 %v7317_v12  ;;  %v4176_v12 = vadd.f32 1e-05, %v7719_v57 }
0x1230   :  { %7199 = vrsqrt.f32 %v4176_v12 }
0x1231   :  { %7201 = vrsqrt.f32 %v1004_v19 }
0x1232   :  { %7203 = vrsqrt.f32 %v3190_v20 }
0x123a   :  { %v7200_v15 = vpop.eup %7199 }
0x123b   :  { %v7202_v22 = vpop.eup %7201 }
0x123c   :  { %v7204_v23 = vpop.eup %7203 }
0x1301   :  { %v5874_v13 = vpop.f32.mrb[22].mxu1 }
0x1302   :  { %5882 = vrot.lane.b32.xlu1 %v5874_v13, %s7236_s14  ;;  %v6983_v18 = vpop.f32.mrb[23].mxu1  ;;  %v5878_v14 = vsel %vm87_vm4, %v5874_v13, 0.0 }
0x1326   :  { %5879 = vadd.xlane.f32.xlu1 %v5878_v14 }
0x1337   :  { %1008 = vperm.xlu1 %7184, %v7455_v10  }
0x133b   :  { %7186 = vset.pattern.permute.xlu1 %v7239_v8 }
0x133c   :  { %1020 = vperm.xlu1 %7186, %v7490_v34  }
0x1340   :  { %7187 = vset.pattern.permute.xlu1 %v7240_v9 }
0x1341   :  { %1025 = vperm.xlu1 %7187, %v7490_v34  }
0x1345   :  { %7188 = vset.pattern.permute.xlu1 %v7237_v21 }
0x1346   :  { %3194 = vperm.xlu1 %7188, %v7717_v55  }
0x134a   :  { %7189 = vset.pattern.permute.xlu1 %v7241_v11 }
0x134b   :  { %3205 = vperm.xlu1 %7189, %v7490_v34  }
0x134f   :  { %7191 = vset.pattern.permute.xlu1 %v7237_v21 }
0x1350   :  { %4180 = vperm.xlu1 %7191, %v7719_v57  }
0x1354   :  { %7192 = vset.pattern.permute.xlu1 %v7238_v35 }
0x1355   :  { %4186 = vperm.xlu1 %7192, %v7200_v15  }
0x1374   :  { %v5883_v16 = vpop.permute.xlu1 %5882 }
0x1375   :  { %v5885_v17 = vsel %vm87_vm4, %v5883_v16, 0.0 }
0x1376   :  { %5886 = vadd.xlane.f32.xlu0 %v5885_v17 }
0x138c   :  { %1014 = vperm.xlu0 %7185, %v7202_v22  }
0x1390   :  { %3200 = vperm.xlu0 %7185, %v7204_v23  }
0x1394   :  { %7190 = vset.pattern.permute.xlu0 %v7242_v24 }
0x1395   :  { %3210 = vperm.xlu0 %7190, %v7490_v34  }
0x1399   :  { %7193 = vset.pattern.permute.xlu0 %v7237_v21 }
0x13b3   :  { %v5880_v57 = vpop.xlane.xlu1 %5879 }
0x13b4   :  { %v5888_v27 = vmul.f32 0.0625, %v5880_v57 }
0x13b6   :  { %v5890_v29 = vmul.f32 %v5888_v27, %v5888_v27 }
0x13b7   :  { %v1009_v25 = vpop.permute.xlu1 %1008 }
0x13b8   :  { %v1011_v33 = vsub.f32 %v7307_v5, %v1009_v25 }
0x13bb   :  { %v7825_v26 = vpop.permute.xlu1 %1020 }
0x13c0   :  { %v7827_v55 = vpop.permute.xlu1 %1025 }
0x13c5   :  { %v3195_v36 = vpop.permute.xlu1 %3194 }
0x13c6   :  { %v3197_v40 = vsub.f32 %v7532_v3, %v3195_v36 }
0x13ca   :  { %v3206_v42 = vpop.permute.xlu1 %3205 }
0x13cf   :  { %v4181_v38 = vpop.permute.xlu1 %4180 }
0x13d0   :  { %v4183_v59 = vsub.f32 %v7574_v28, %v4181_v38 }
0x13d4   :  { %v4187_v56 = vpop.permute.xlu1 %4186 }
0x13d5   :  { %v4189_v61 = vmul.f32 %v4187_v56, %v4183_v59 }
0x1403   :  { %v5887_v10 = vpop.xlane.xlu0 %5886 }
0x1404   :  { %v5889_v30 = vmul.f32 0.0625, %v5887_v10 }
0x1406   :  { %v5891_v31 = vsub.f32 %v5889_v30, %v5890_v29 }
0x1408   :  { %v5892_v32 = vsel %vm553_vm5, %v5888_v27, %v5891_v31 }
0x1409   :  { %v5894_v4 = vand.u32 4294901760, %v5892_v32 }
0x140b   :  { %v1015_v34 = vpop.permute.xlu0 %1014  ;;  %6985 = vmatpush3.msra.mxu0 %v5894_v4  ;;  %v5971_v21 = vsub.f32 %v5892_v32, %v5894_v4 }
0x140c   :  { %6987 = vmatmul.mubr.f32.vlgmr.msra.gmra.mrb[18].mxu0 %v7403_v58  ;;  %6989 = vmatprep.subr.mxu0 %v7231_v1  ;;  %v1017_v37 = vmul.f32 %v1015_v34, %v1011_v33 }
0x140d   :  { %v5972_v39 = vand.u32 4294901760, %v5971_v21  ;;  %6991 = vmatprep.mubr.msk.f32.mxu0 %vm7232_vm1, %v7231_v1 }
0x140e   :  { %v1023_v5 = vmul.f32 %v7825_v26, %v1017_v37 }
0x140f   :  { %v3201_v41 = vpop.permute.xlu0 %3200  ;;  %v5973_v49 = vsub.f32 %v5971_v21, %v5972_v39 }
0x1410   :  { %v3203_v62 = vmul.f32 %v3201_v41, %v3197_v40  ;;  %v1028_v58 = vadd.f32 %v7827_v55, %v1023_v5 }
0x1411   :  { %v5974_v43 = vand.u32 4294901760, %v5973_v49 }
0x1412   :  { %v3208_v44 = vmul.f32 %v3206_v42, %v3203_v62 }
0x1413   :  { %6990 = vmatpush3.msra.mxu0 %v5974_v43 }
0x1414   :  { %v3211_v45 = vpop.permute.xlu0 %3210  ;;  %6992 = vmatmul.mubr.f32.vlgmr.msra.gmra.mrb[18].mxu0 %v7392_v47  ;;  %6994 = vmatprep.subr.mxu0 %v7231_v1 }
0x1415   :  { %v3213_v46 = vadd.f32 %v3211_v45, %v3208_v44  ;;  %6995 = vmatpush3.msra.mxu0 %v5971_v21  ;;  %6996 = vmatprep.mubr.msk.f32.mxu0 %vm7232_vm1, %v7231_v1 }
0x1416   :  { %6999 = vmatprep.subr.mxu0 %v7231_v1 }
0x1417   :  { %v3214_v3 = vadd.f32 %v3213_v46, %v1028_v58 }
0x1419   :  { %v3215_v50 = vmax.f32 %v3214_v3, 0.0 }
0x141b   :  { %3216 = vst.msk [vmem:[#allocation2] sm:$0xff] %vm87_vm4, %v3215_v50 }
0x141c   :  { %6997 = vmatmul.mubr.f32.vlgmr.msra.gmra.mrb[18].mxu0 %v7395_v48 }
0x141d   :  { %7000 = vmatpush3.msra.mxu0 %v5894_v4  ;;  %7001 = vmatprep.mubr.msk.f32.mxu0 %vm7232_vm1, %v7231_v1 }
0x141e   :  { %7004 = vmatprep.subr.mxu0 %v7231_v1 }
0x1424   :  { %7002 = vmatmul.mubr.f32.vlgmr.msra.gmra.mrb[18].mxu0 %v7398_v51 }
0x1425   :  { %7005 = vmatpush3.msra.mxu0 %v5972_v39  ;;  %7006 = vmatprep.mubr.msk.f32.mxu0 %vm7232_vm1, %v7231_v1 }
0x1426   :  { %7009 = vmatprep.subr.mxu0 %v7231_v1 }
0x142c   :  { %7007 = vmatmul.mubr.f32.vlgmr.msra.gmra.mrb[18].mxu0 %v7392_v47 }
0x142d   :  { %7010 = vmatpush3.msra.mxu0 %v5894_v4  ;;  %7011 = vmatprep.mubr.msk.f32.mxu0 %vm7232_vm1, %v7231_v1 }
0x1434   :  { %7012 = vmatmul.mubr.f32.vlgmr.msra.gmra.mrb[18].mxu0 %v7392_v47  ;;  %v4190_v47 = vmul.f32 %v4189_v61, %v7825_v26 }
0x1436   :  { %v4191_v6 = vadd.f32 %v4190_v47, %v7827_v55 }
0x1507   :  { %v6335_v48 = vpop.f32.mrb[18].mxu0 }
0x1508   :  { %v6339_v52 = vadd.f32 1e-05, %v6335_v48  ;;  %6343 = vperm.xlu0 %7193, %v6335_v48   ;;  %v7013_v54 = vpop.f32.mrb[19].mxu0 }
0x150a   :  { %7205 = vrsqrt.f32 %v6339_v52 }
0x150c   :  { %7194 = vset.pattern.permute.xlu0 %v7238_v35 }
0x1514   :  { %v7206_v51 = vpop.eup %7205 }
0x1515   :  { %6349 = vperm.xlu1 %7192, %v7206_v51  }
0x1587   :  { %v6344_v60 = vpop.permute.xlu0 %6343 }
0x1588   :  { %v6346_v63 = vsub.f32 %v7780_v53, %v6344_v60 }
0x1594   :  { %v6350_v1 = vpop.permute.xlu1 %6349 }
0x1595   :  { %v6352_v0 = vmul.f32 %v6350_v1, %v6346_v63 }
0x1597   :  { %v6353_v2 = vmul.f32 %v6352_v0, %v3206_v42 }
0x1599   :  { %v6354_v7 = vadd.f32 %v6353_v2, %v3211_v45 }
0x159b   :  { %v6355_v35 = vadd.f32 %v6354_v7, %v4191_v6 }
0x159d   :  { %v6356_v13 = vmax.f32 %v6355_v35, 0.0 }
0x159f   :  { %6358 = vst.msk [vmem:[#allocation2 + $0x8] sm:$0xff] %vm87_vm4, %v6356_v13 }
0x15a0   :  { %7218 = shalt.err (!%p7215_p4)
}
0x15a1   :  { %s7219_s14 = scalar_lea.hbm %s7881_s7, 256 }
0x15a2   :  { %p7220_p5 = scmp.ne.s32.totalorder %s7881_s7, %s7219_s14  ;;  %p7223_p6 = scmp.lt.u32.totalorder %s7219_s14, %s7881_s7 }
0x15a4   :  { %p7225_p7 = pnand %p7223_p6, %p7220_p5 }
0x15a6   :  { %7228 = shalt.err (!%p7225_p7)
}
0x15a7   :  { %s7244_s4 = smov 128   ;;  %s7245_s18 = smov 8  }
0x15a8   :  { %6370 = dma.vmem_to_hbm [thread:$0]  %s6365_s3, 256, %s7881_s7, [#allocation3], %s7244_s4, %s7244_s4, %s7245_s18  }
0x15a9   :  { %7229 = dma.done.wait [#allocation3], 256  }
0x15aa   :  { %7230 = vsyncadd [#allocation3], 4294967040 }
0x15ab   :  { %6374 = vsyncpa [#allocation3], 1 }

</bundles_post_ra>
